<compile_context>
chip_gen: v6e
topology: v6e:2x2x1
jax: 0.10.0
libtpu: 0.0.40
codegen_flags: <defaults>
</compile_context>

<pallas_src>
import jax
import jax.numpy as jnp
import numpy as np
from jax.experimental import pallas as pl
from jax.experimental.pallas import tpu as pltpu


def _fused_attn_kernel(x_ref, w_ref, b_ref, mask_ref, o_ref):
    # x_ref:    (bb, S, D)   activations for this grid step
    # w_ref:    (D, 3D)      bf16 fused QKV weight (q-scale folded in)
    # b_ref:    (1, 3D)      f32 fused QKV bias   (q-scale folded in)
    # mask_ref: (bb, S, S)   additive attention mask
    # o_ref:    (bb, S, D)   output
    bb, S, D = x_ref.shape

    # Single fused projection on the MXU: M = bb*S rows, N = 3D columns.
    x2d = x_ref[...].astype(jnp.bfloat16).reshape(bb * S, D)
    qkv = jnp.dot(x2d, w_ref[...], preferred_element_type=jnp.float32)
    qkv = qkv + b_ref[...]                                   # (bb*S, 3D) f32

    # Lane-aligned slices (D is a multiple of 128) -> cheap.
    q = qkv[:, 0:D].reshape(bb, S, D)
    k = qkv[:, D:2 * D].reshape(bb, S, D)
    v = qkv[:, 2 * D:3 * D].reshape(bb, S, D)

    # scores: contract on k's minor dim (native transposed-RHS MXU load).
    s = jnp.einsum("bqd,bkd->bqk",
                   q.astype(jnp.bfloat16), k.astype(jnp.bfloat16),
                   preferred_element_type=jnp.float32)       # (bb, S, S)
    s = s + mask_ref[...]

    # Numerically stable softmax; normalization deferred past the PV matmul.
    m = jnp.max(s, axis=-1, keepdims=True)
    e = jnp.exp(s - m)                                       # (bb, S, S)
    denom = jnp.sum(e, axis=-1, keepdims=True)               # (bb, S, 1)
    inv = pl.reciprocal(denom, approx=True)                  # EUP vrcp

    # dropout with p = 0 is the identity -> skipped.
    o = jnp.einsum("bqk,bkd->bqd",
                   e.astype(jnp.bfloat16), v.astype(jnp.bfloat16),
                   preferred_element_type=jnp.float32)       # (bb, S, D)
    o_ref[...] = (o * inv).astype(o_ref.dtype)


def fused_attention(x1, w_qkv, b_qkv, attn_mask):
    """x1: (B,S,D) f32; w_qkv: (D,3D); b_qkv: (3D,); attn_mask: (B,S,S)."""
    B, S, D = x1.shape
    assert w_qkv.shape == (D, 3 * D)
    assert b_qkv.shape == (3 * D,)
    assert attn_mask.shape == (B, S, S)

    scale = jnp.float32(D) ** jnp.float32(-0.5)

    # Parameter prep (outside the hot path): fold the q scale into the first D
    # columns of the fused weight/bias, cast W to bf16 for the MXU.
    w = w_qkv.astype(jnp.float32)
    w_fused = jnp.concatenate([w[:, 0:D] * scale, w[:, D:]], axis=1)
    w_fused = w_fused.astype(jnp.bfloat16)                       # (D, 3D)
    b = b_qkv.astype(jnp.float32)
    b_fused = jnp.concatenate([b[0:D] * scale, b[D:]]).reshape(1, 3 * D)

    # Generation-aware grid choice:
    #   * dual-TC v7x: grid=(B,) "parallel" so both TensorCores are used.
    #   * single-TC v5e/v6e (grid is a serial loop): collapse to one step and
    #     batch the projection as (B*S, D) to fill the MXU rows.
    try:
        dual_tc = "v7" in jax.devices()[0].device_kind.lower()
    except Exception:  # pragma: no cover - conservative fallback
        dual_tc = False
    num_steps = B if (dual_tc and B > 1) else 1
    bb = B // num_steps
    if bb * num_steps != B:           # uneven split -> single step
        num_steps, bb = 1, B

    # Advisory cost estimate for XLA's scheduler.
    flops = 2 * B * S * D * (3 * D) + 2 * (2 * B * S * S * D)
    transcendentals = B * S * S
    bytes_accessed = (B * S * D * 4 + D * 3 * D * 2 + 3 * D * 4
                      + B * S * S * 4 + B * S * D * 4)
    cost = pl.CostEstimate(flops=flops, transcendentals=transcendentals,
                           bytes_accessed=bytes_accessed)

    return pl.pallas_call(
        _fused_attn_kernel,
        out_shape=jax.ShapeDtypeStruct((B, S, D), x1.dtype),
        grid_spec=pltpu.PrefetchScalarGridSpec(
            num_scalar_prefetch=0,
            grid=(num_steps,),
            in_specs=[
                pl.BlockSpec((bb, S, D), lambda i: (i, 0, 0)),      # x1
                pl.BlockSpec((D, 3 * D), lambda i: (0, 0)),         # fused W
                pl.BlockSpec((1, 3 * D), lambda i: (0, 0)),         # fused b
                pl.BlockSpec((bb, S, S), lambda i: (i, 0, 0)),      # mask
            ],
            out_specs=pl.BlockSpec((bb, S, D), lambda i: (i, 0, 0)),
        ),
        compiler_params=pltpu.CompilerParams(
            dimension_semantics=("parallel",),
        ),
        cost_estimate=cost,
    )(x1, w_fused, b_fused, attn_mask)


def reference(x1, w_qkv, b_qkv, attn_mask):
    D = x1.shape[-1]
    qkv = jnp.einsum("bsd,de->bse", x1, w_qkv) + b_qkv
    q, k, v = jnp.split(qkv, 3, axis=-1)
    q = q * (D ** -0.5)
    s = jnp.einsum("bqd,bkd->bqk", q, k) + attn_mask
    p = jax.nn.softmax(s, axis=-1)
    return jnp.einsum("bqk,bkd->bqd", p, v)


if __name__ == "__main__":
    # Small, TPU-tile-friendly shapes consistent with the module's forward.
    B, S, D = 2, 128, 128   # batch, seq, d_model

    key = jax.random.PRNGKey(0)
    k_x, k_m, k_w, k_b, k_x2 = jax.random.split(key, 5)

    x1 = jax.random.normal(k_x, (B, S, D), dtype=jnp.float32)
    x2 = jax.random.normal(k_x2, (B, S, D), dtype=jnp.float32)  # unused (as in reference)
    attn_mask = jax.random.normal(k_m, (B, S, S), dtype=jnp.float32)

    # Deterministic Linear(d_model, 3*d_model) parameters (nn.Linear-style uniform init).
    bound = 1.0 / np.sqrt(D)
    w_qkv = jax.random.uniform(k_w, (D, 3 * D), jnp.float32, -bound, bound)
    b_qkv = jax.random.uniform(k_b, (3 * D,), jnp.float32, -bound, bound)

    out = fused_attention(x1, w_qkv, b_qkv, attn_mask)
    out = jax.block_until_ready(out)

    ref = reference(x1, w_qkv, b_qkv, attn_mask)
    # bf16 MXU operands with f32 accumulation -> ~1e-2-level agreement with the
    # pure-f32 reference; tolerance loosened accordingly.
    np.testing.assert_allclose(np.asarray(out), np.asarray(ref), rtol=3e-2, atol=3e-2)

    print("KERNEL_OK")
</pallas_src>

<mosaic_0001>
module attributes {stable_mosaic.version = 11 : i64} {
  func.func @_fused_attn_kernel(%arg0: i32, %arg1: memref<2x128x128xf32, #tpu.memory_space<vmem>>, %arg2: memref<128x384xbf16, #tpu.memory_space<vmem>>, %arg3: memref<1x384xf32, #tpu.memory_space<vmem>>, %arg4: memref<2x128x128xf32, #tpu.memory_space<vmem>>, %arg5: memref<2x128x128xf32, #tpu.memory_space<vmem>>) attributes {dimension_semantics = [#tpu.dimension_semantics<parallel>], iteration_bounds = array<i64: 1>, scalar_prefetch = 0 : i64, scratch_operands = 0 : i64, tpu.core_type = #tpu.core_type<tc>, window_params = [{transform_indices = @transform_0, window_bounds = array<i64: 2, 128, 128>}, {pipeline_mode = #tpu.pipeline_mode<synchronous>, transform_indices = @transform_1, window_bounds = array<i64: 128, 384>}, {pipeline_mode = #tpu.pipeline_mode<synchronous>, transform_indices = @transform_2, window_bounds = array<i64: 1, 384>}, {transform_indices = @transform_3, window_bounds = array<i64: 2, 128, 128>}, {transform_indices = @transform_4, window_bounds = array<i64: 2, 128, 128>}]} {
    %c0 = arith.constant 0 : index
    %c0_0 = arith.constant 0 : index
    %c0_1 = arith.constant 0 : index
    %0 = vector.load %arg1[%c0, %c0_0, %c0_1] : memref<2x128x128xf32, #tpu.memory_space<vmem>>, vector<2x128x128xf32>
    %1 = arith.truncf %0 : vector<2x128x128xf32> to vector<2x128x128xbf16>
    %2 = vector.shape_cast %1 : vector<2x128x128xbf16> to vector<256x128xbf16>
    %c0_2 = arith.constant 0 : index
    %c0_3 = arith.constant 0 : index
    %3 = vector.load %arg2[%c0_2, %c0_3] : memref<128x384xbf16, #tpu.memory_space<vmem>>, vector<128x384xbf16>
    %cst = arith.constant dense<0.000000e+00> : vector<256x384xf32>
    %4 = tpu.matmul %2, %3, %cst {dimension_numbers = #tpu.dot_dimension_numbers<[1], [0], [0], [1], [0, 0, 1, 1], [], []>} : vector<256x128xbf16>, vector<128x384xbf16>, vector<256x384xf32> -> vector<256x384xf32>
    %c0_4 = arith.constant 0 : index
    %c0_5 = arith.constant 0 : index
    %5 = vector.load %arg3[%c0_4, %c0_5] : memref<1x384xf32, #tpu.memory_space<vmem>>, vector<1x384xf32>
    %6 = vector.broadcast %5 : vector<1x384xf32> to vector<256x384xf32>
    %7 = arith.addf %4, %6 : vector<256x384xf32>
    %8 = vector.extract_strided_slice %7 {offsets = [0, 0], sizes = [256, 128], strides = [1, 1]} : vector<256x384xf32> to vector<256x128xf32>
    %9 = vector.shape_cast %8 : vector<256x128xf32> to vector<2x128x128xf32>
    %10 = vector.extract_strided_slice %7 {offsets = [0, 128], sizes = [256, 128], strides = [1, 1]} : vector<256x384xf32> to vector<256x128xf32>
    %11 = vector.shape_cast %10 : vector<256x128xf32> to vector<2x128x128xf32>
    %12 = vector.extract_strided_slice %7 {offsets = [0, 256], sizes = [256, 128], strides = [1, 1]} : vector<256x384xf32> to vector<256x128xf32>
    %13 = vector.shape_cast %12 : vector<256x128xf32> to vector<2x128x128xf32>
    %14 = arith.truncf %9 : vector<2x128x128xf32> to vector<2x128x128xbf16>
    %15 = arith.truncf %11 : vector<2x128x128xf32> to vector<2x128x128xbf16>
    "tpu.trace_start"() <{level = 10 : i32, message = "bqd,bkd->bqk"}> : () -> ()
    %cst_6 = arith.constant dense<0.000000e+00> : vector<2x128x128xf32>
    %16 = tpu.matmul %14, %15, %cst_6 {dimension_numbers = #tpu.dot_dimension_numbers<[2], [2], [1], [1], [0, 0, 0, 1, 1, 1], [0], [0]>} : vector<2x128x128xbf16>, vector<2x128x128xbf16>, vector<2x128x128xf32> -> vector<2x128x128xf32>
    "tpu.trace_stop"() : () -> ()
    %c0_7 = arith.constant 0 : index
    %c0_8 = arith.constant 0 : index
    %c0_9 = arith.constant 0 : index
    %17 = vector.load %arg4[%c0_7, %c0_8, %c0_9] : memref<2x128x128xf32, #tpu.memory_space<vmem>>, vector<2x128x128xf32>
    %18 = arith.addf %16, %17 : vector<2x128x128xf32>
    %cst_10 = arith.constant dense<0xFF800000> : vector<2x128xf32>
    %19 = vector.multi_reduction <maximumf>, %18, %cst_10 [2] : vector<2x128x128xf32> to vector<2x128xf32>
    %20 = vector.shape_cast %19 : vector<2x128xf32> to vector<2x128x1xf32>
    %21 = vector.broadcast %20 : vector<2x128x1xf32> to vector<2x128x128xf32>
    %22 = arith.subf %18, %21 : vector<2x128x128xf32>
    %23 = math.exp %22 : vector<2x128x128xf32>
    %cst_11 = arith.constant dense<0.000000e+00> : vector<2x128xf32>
    %24 = vector.multi_reduction <add>, %23, %cst_11 [2] : vector<2x128x128xf32> to vector<2x128xf32>
    %25 = vector.shape_cast %24 : vector<2x128xf32> to vector<2x128x1xf32>
    %26 = tpu.reciprocal %25 {approx = true} : vector<2x128x1xf32> -> vector<2x128x1xf32>
    %27 = arith.truncf %23 : vector<2x128x128xf32> to vector<2x128x128xbf16>
    %28 = arith.truncf %13 : vector<2x128x128xf32> to vector<2x128x128xbf16>
    "tpu.trace_start"() <{level = 10 : i32, message = "bqk,bkd->bqd"}> : () -> ()
    %cst_12 = arith.constant dense<0.000000e+00> : vector<2x128x128xf32>
    %29 = tpu.matmul %27, %28, %cst_12 {dimension_numbers = #tpu.dot_dimension_numbers<[2], [1], [1], [2], [0, 0, 0, 1, 1, 2], [0], [0]>} : vector<2x128x128xbf16>, vector<2x128x128xbf16>, vector<2x128x128xf32> -> vector<2x128x128xf32>
    "tpu.trace_stop"() : () -> ()
    %30 = vector.broadcast %26 : vector<2x128x1xf32> to vector<2x128x128xf32>
    %31 = arith.mulf %29, %30 : vector<2x128x128xf32>
    %c0_13 = arith.constant 0 : index
    %c0_14 = arith.constant 0 : index
    %c0_15 = arith.constant 0 : index
    %32 = vector.load %arg5[%c0_13, %c0_14, %c0_15] : memref<2x128x128xf32, #tpu.memory_space<vmem>>, vector<2x128x128xf32>
    tpu.vector_store %arg5[%c0_13, %c0_14, %c0_15], %31 {strides = array<i32>} : memref<2x128x128xf32, #tpu.memory_space<vmem>>, vector<2x128x128xf32>,
    return
  }
  func.func @transform_0(%arg0: i32) -> (i32, i32, i32) {
    %c0_i32 = arith.constant 0 : i32
    %c0_i32_0 = arith.constant 0 : i32
    %c0_i32_1 = arith.constant 0 : i32
    return %arg0, %c0_i32, %c0_i32_0 : i32, i32, i32
  }
  func.func @transform_1(%arg0: i32) -> (i32, i32) {
    %c0_i32 = arith.constant 0 : i32
    %c0_i32_0 = arith.constant 0 : i32
    %c0_i32_1 = arith.constant 0 : i32
    return %c0_i32, %c0_i32_0 : i32, i32
  }
  func.func @transform_2(%arg0: i32) -> (i32, i32) {
    %c0_i32 = arith.constant 0 : i32
    %c0_i32_0 = arith.constant 0 : i32
    %c0_i32_1 = arith.constant 0 : i32
    return %c0_i32, %c0_i32_0 : i32, i32
  }
  func.func @transform_3(%arg0: i32) -> (i32, i32, i32) {
    %c0_i32 = arith.constant 0 : i32
    %c0_i32_0 = arith.constant 0 : i32
    %c0_i32_1 = arith.constant 0 : i32
    return %arg0, %c0_i32, %c0_i32_0 : i32, i32, i32
  }
  func.func @transform_4(%arg0: i32) -> (i32, i32, i32) {
    %c0_i32 = arith.constant 0 : i32
    %c0_i32_0 = arith.constant 0 : i32
    %c0_i32_1 = arith.constant 0 : i32
    return %arg0, %c0_i32, %c0_i32_0 : i32, i32, i32
  }
}

</mosaic_0001>

<bundles_post_ra>
// kernel: tpu_custom_call.1
= control target key start
LH: loop header
LB: loop body
LE: loop exit
PB: predicated region body
PF: predicated region fallthrough
CT: control target
= control target key end

     0   :  { %9 = vsyncpa [#allocation3], 0  ;;  %s2551_s0 = inlined_call_operand.hbm [shape: f32[2,128,128], index: 0, kind: input, shape index: {}]   ;;  %s2552_s1 = inlined_call_operand.hbm [shape: bf16[128,384], index: 1, kind: input, shape index: {}]   ;;  %s2553_s2 = inlined_call_operand.vmem [shape: f32[1,384], index: 2, kind: input, shape index: {}]   ;;  %s2554_s3 = inlined_call_operand.hbm [shape: f32[2,128,128], index: 3, kind: input, shape index: {}]   ;;  %s2555_s4 = inlined_call_operand.hbm [shape: f32[2,128,128], index: 4, kind: output, shape index: {}]  }
   0x1   :  { %10 = vsyncpa [#allocation6], 0 }
   0x2   :  { %11 = vsyncpa [#allocation4], 0  ;;  %s2004_s15 = smov [#allocation5]  }
   0x3   :  { %s29_s16 = sshll.u32 %s2004_s15, 4  ;;  %s30_s16 = int_to_ptr.vmem [resolvable:$true] %s29_s16 }
   0x4   :  { %s1926_s17 = scalar_lea.vmem %s30_s16, 3072  ;;  %p1931_p1 = scmp.lt.s32.totalorder %s30_s16, %s30_s16 }
   0x5   :  { %p1927_p0 = scmp.ne.s32.totalorder %s30_s16, %s1926_s17  ;;  %p1932_p2 = scmp.lt.s32.totalorder %s1926_s17, %s1926_s17 }
   0x7   :  { %p1933_p3 = por %p1932_p2, %p1931_p1 }
   0x9   :  { %p1934_p4 = pnand %p1933_p3, %p1927_p0 }
   0xb   :  { %1937 = shalt.err (!%p1934_p4)
}
   0xc   :  { %s2005_s18 = smov 192   ;;  %s2006_s19 = smov 12  }
   0xd   :  { %35 = dma.hbm_to_vmem [thread:$0]  %s2552_s1, 3072, %s30_s16, [#allocation6], %s2005_s18, %s2005_s18, %s2006_s19  }
   0xe   :  { %s2007_s22 = smov [#allocation2]  }
   0xf   :  { %s17_s23 = sshll.u32 %s2007_s22, 4  ;;  %s18_s23 = int_to_ptr.vmem [resolvable:$true] %s17_s23 }
  0x10   :  { %s1946_s24 = scalar_lea.vmem %s18_s23, 4096  ;;  %p1951_p6 = scmp.lt.s32.totalorder %s18_s23, %s18_s23 }
  0x11   :  { %p1947_p5 = scmp.ne.s32.totalorder %s18_s23, %s1946_s24  ;;  %p1952_p7 = scmp.lt.s32.totalorder %s1946_s24, %s1946_s24 }
  0x13   :  { %p1953_p8 = por %p1952_p7, %p1951_p6 }
  0x15   :  { %p1954_p9 = pnand %p1953_p8, %p1947_p5 }
  0x17   :  { %1957 = shalt.err (!%p1954_p9)
}
  0x18   :  { %s2008_s25 = smov 128   ;;  %s2009_s26 = smov 8  }
  0x19   :  { %23 = dma.hbm_to_vmem [thread:$0]  %s2551_s0, 4096, %s18_s23, [#allocation3], %s2008_s25, %s2008_s25, %s2009_s26  }
  0x1a   :  { %s2010_s1 = smov [#allocation7]  }
  0x1b   :  { %s43_s29 = sshll.u32 %s2010_s1, 4  ;;  %s44_s29 = int_to_ptr.vmem [resolvable:$true] %s43_s29 }
  0x1c   :  { %s1966_s30 = scalar_lea.vmem %s44_s29, 4096  ;;  %p1971_p11 = scmp.lt.s32.totalorder %s44_s29, %s44_s29 }
  0x1d   :  { %p1967_p10 = scmp.ne.s32.totalorder %s44_s29, %s1966_s30  ;;  %p1972_p12 = scmp.lt.s32.totalorder %s1966_s30, %s1966_s30 }
  0x1f   :  { %p1973_p13 = por %p1972_p12, %p1971_p11 }
  0x21   :  { %p1974_p0 = pnand %p1973_p13, %p1967_p10 }
  0x23   :  { %1977 = shalt.err (!%p1974_p0)
}
  0x24   :  { %49 = dma.hbm_to_vmem [thread:$0]  %s2554_s3, 4096, %s44_s29, [#allocation6], %s2008_s25, %s2008_s25, %s2009_s26  }
  0x25   :  { %1998 = dma.done.wait [#allocation3], 4096  }
  0x26   :  { %1999 = vsyncadd [#allocation3], 4294963200 }
  0x27   :  { %2000 = dma.done.wait [#allocation6], 7168  }
  0x28   :  { %2001 = vsyncadd [#allocation6], 4294960128  ;;  %v2011_v0 = vmov 0   ;;  %v1758_v1 = vld [vmem:[#allocation5 + $0xac] ss:$12 sps:$4 sm:$0xff]   ;;  %v60_v8 = vld [vmem:[#allocation2] sm:$0xff] }
  0x29   :  { %317 = vmatprep.mubr.bf16.mxu0 %v2011_v0  ;;  %v1760_v2 = vld [vmem:[#allocation5 + $0xa8] ss:$12 sps:$4 sm:$0xff]   ;;  %285 = vmatprep.subr.bf16.mxu0 %v1758_v1  ;;  %v1763_v4 = vld [vmem:[#allocation5 + $0x90] ss:$12 sps:$4 sm:$0xff]   ;;  %v1766_v6 = vld [vmem:[#allocation5 + $0x78] ss:$12 sps:$4 sm:$0xff]  }
  0x2a   :  { %v1761_v3 = vld [vmem:[#allocation5 + $0x94] ss:$12 sps:$4 sm:$0xff]   ;;  %286 = vmatpush1.bf16.msra.mxu0 %v1760_v2  ;;  %v1764_v5 = vld [vmem:[#allocation5 + $0x7c] ss:$12 sps:$4 sm:$0xff]   ;;  %v1767_v7 = vld [vmem:[#allocation5 + $0x64] ss:$12 sps:$4 sm:$0xff]  }
  0x2b   :  { %287 = vmatprep.subr.bf16.mxu0 %v1761_v3  ;;  %v1769_v9 = vld [vmem:[#allocation5 + $0x60] ss:$12 sps:$4 sm:$0xff]   ;;  %v1772_v13 = vld [vmem:[#allocation5 + $0x48] ss:$12 sps:$4 sm:$0xff]   ;;  %v1775_v15 = vld [vmem:[#allocation5 + $0x30] ss:$12 sps:$4 sm:$0xff]  }
  0x2c   :  { %v61_v10 = vld [vmem:[#allocation2 + $0x8] sm:$0xff]  ;;  %v1773_v14 = vld [vmem:[#allocation5 + $0x34] ss:$12 sps:$4 sm:$0xff]   ;;  %v1782_v17 = vld [vmem:[#allocation5 + $0xb0] ss:$12 sps:$4 sm:$0xff]  }
  0x2d   :  { %v1770_v11 = vld [vmem:[#allocation5 + $0x4c] ss:$12 sps:$4 sm:$0xff]   ;;  %v92_v12 = vpack.c.bf16 %v61_v10, %v60_v8  ;;  %v1776_v16 = vld [vmem:[#allocation5 + $0x1c] ss:$12 sps:$4 sm:$0xff]   ;;  %v1779_v20 = vld [vmem:[#allocation5 + $0x4] ss:$12 sps:$4 sm:$0xff]   ;;  %1573 = vmatprep.subr.bf16.mxu1 %v1782_v17  ;;  %v142_v10 = vlaneseq }
  0x2e   :  { %288 = vmatpush1.bf16.msra.mxu0 %v1763_v4  ;;  %v1778_v18 = vld [vmem:[#allocation5 + $0x18] ss:$12 sps:$4 sm:$0xff]   ;;  %1574 = vmatpush3.bf16.msra.mxu1 %v1782_v17  ;;  %v1784_v21 = vld [vmem:[#allocation5 + $0x80] ss:$12 sps:$4 sm:$0xff]   ;;  %v1785_v23 = vld [vmem:[#allocation5 + $0x68] ss:$12 sps:$4 sm:$0xff]  }
  0x2f   :  { %289 = vmatprep.subr.bf16.mxu0 %v1764_v5  ;;  %1589 = vmatprep.mubr.bf16.mxu1 %v92_v12  ;;  %v1783_v19 = vld [vmem:[#allocation5 + $0x98] ss:$12 sps:$4 sm:$0xff]   ;;  %v1781_v22 = vld [vmem:[#allocation5] ss:$12 sps:$4 sm:$0xff]   ;;  %v1786_v24 = vld [vmem:[#allocation5 + $0x50] ss:$12 sps:$4 sm:$0xff]  }
  0x30   :  { %1575 = vmatprep.subr.bf16.mxu1 %v1783_v19  ;;  %v62_v25 = vld [vmem:[#allocation2 + $0x10] sm:$0xff]  ;;  %v63_v26 = vld [vmem:[#allocation2 + $0x18] sm:$0xff]  ;;  %v1788_v29 = vld [vmem:[#allocation5 + $0x20] ss:$12 sps:$4 sm:$0xff]  }
  0x31   :  { %v1787_v27 = vld [vmem:[#allocation5 + $0x38] ss:$12 sps:$4 sm:$0xff]   ;;  %v93_v28 = vpack.c.bf16 %v63_v26, %v62_v25  ;;  %v65_v31 = vld [vmem:[#allocation2 + $0x28] sm:$0xff]  ;;  %v66_v34 = vld [vmem:[#allocation2 + $0x30] sm:$0xff] }
  0x32   :  { %290 = vmatpush1.bf16.msra.mxu0 %v1766_v6  ;;  %1576 = vmatpush3.bf16.msra.mxu1 %v1783_v19  ;;  %v64_v30 = vld [vmem:[#allocation2 + $0x20] sm:$0xff]  ;;  %v1789_v32 = vld [vmem:[#allocation5 + $0x8] ss:$12 sps:$4 sm:$0xff]   ;;  %v67_v35 = vld [vmem:[#allocation2 + $0x38] sm:$0xff] }
  0x33   :  { %291 = vmatprep.subr.bf16.mxu0 %v1767_v7  ;;  %1577 = vmatprep.subr.bf16.mxu1 %v1784_v21  ;;  %v94_v33 = vpack.c.bf16 %v65_v31, %v64_v30  ;;  %v95_v36 = vpack.c.bf16 %v67_v35, %v66_v34  ;;  %v68_v37 = vld [vmem:[#allocation2 + $0x40] sm:$0xff]  ;;  %v69_v38 = vld [vmem:[#allocation2 + $0x48] sm:$0xff]  ;;  %v70_v40 = vld [vmem:[#allocation2 + $0x50] sm:$0xff] }
  0x34   :  { %v96_v39 = vpack.c.bf16 %v69_v38, %v68_v37  ;;  %v71_v41 = vld [vmem:[#allocation2 + $0x58] sm:$0xff]  ;;  %v72_v42 = vld [vmem:[#allocation2 + $0x60] sm:$0xff]  ;;  %v73_v43 = vld [vmem:[#allocation2 + $0x68] sm:$0xff] }
  0x35   :  { %v97_v44 = vpack.c.bf16 %v71_v41, %v70_v40  ;;  %v98_v45 = vpack.c.bf16 %v73_v43, %v72_v42  ;;  %v74_v46 = vld [vmem:[#allocation2 + $0x70] sm:$0xff]  ;;  %v75_v47 = vld [vmem:[#allocation2 + $0x78] sm:$0xff]  ;;  %v76_v48 = vld [vmem:[#allocation2 + $0x80] sm:$0xff] }
  0x36   :  { %292 = vmatpush1.bf16.msra.mxu0 %v1769_v9  ;;  %1578 = vmatpush3.bf16.msra.mxu1 %v1784_v21  ;;  %v77_v49 = vld [vmem:[#allocation2 + $0x88] sm:$0xff]  ;;  %v99_v50 = vpack.c.bf16 %v75_v47, %v74_v46  ;;  %v78_v52 = vld [vmem:[#allocation2 + $0x90] sm:$0xff]  ;;  %v79_v53 = vld [vmem:[#allocation2 + $0x98] sm:$0xff] }
  0x37   :  { %293 = vmatprep.subr.bf16.mxu0 %v1770_v11  ;;  %1579 = vmatprep.subr.bf16.mxu1 %v1785_v23  ;;  %v100_v51 = vpack.c.bf16 %v77_v49, %v76_v48  ;;  %v80_v54 = vld [vmem:[#allocation2 + $0xa0] sm:$0xff]  ;;  %v81_v55 = vld [vmem:[#allocation2 + $0xa8] sm:$0xff]  ;;  %v101_v56 = vpack.c.bf16 %v79_v53, %v78_v52  ;;  %v82_v58 = vld [vmem:[#allocation2 + $0xb0] sm:$0xff]  ;;  %v2069_v11 = vshrl.u32 %v142_v10, 7 }
  0x38   :  { %v102_v57 = vpack.c.bf16 %v81_v55, %v80_v54  ;;  %v83_v59 = vld [vmem:[#allocation2 + $0xb8] sm:$0xff]  ;;  %v84_v60 = vld [vmem:[#allocation2 + $0xc0] sm:$0xff]  ;;  %v85_v61 = vld [vmem:[#allocation2 + $0xc8] sm:$0xff] }
  0x39   :  { %v103_v62 = vpack.c.bf16 %v83_v59, %v82_v58  ;;  %v104_v63 = vpack.c.bf16 %v85_v61, %v84_v60  ;;  %v86_v1 = vld [vmem:[#allocation2 + $0xd0] sm:$0xff]  ;;  %v87_v2 = vld [vmem:[#allocation2 + $0xd8] sm:$0xff]  ;;  %v88_v3 = vld [vmem:[#allocation2 + $0xe0] sm:$0xff] }
  0x3a   :  { %294 = vmatpush1.bf16.msra.mxu0 %v1772_v13  ;;  %1580 = vmatpush3.bf16.msra.mxu1 %v1785_v23  ;;  %v89_v4 = vld [vmem:[#allocation2 + $0xe8] sm:$0xff]  ;;  %v105_v5 = vpack.c.bf16 %v87_v2, %v86_v1  ;;  %v90_v7 = vld [vmem:[#allocation2 + $0xf0] sm:$0xff]  ;;  %v91_v8 = vld [vmem:[#allocation2 + $0xf8] sm:$0xff] }
  0x3b   :  { %295 = vmatprep.subr.bf16.mxu0 %v1773_v14  ;;  %1581 = vmatprep.subr.bf16.mxu1 %v1786_v24  ;;  %v106_v6 = vpack.c.bf16 %v89_v4, %v88_v3  ;;  %v107_v9 = vpack.c.bf16 %v91_v8, %v90_v7  ;;  %v2075_v13 = vld [vmem:[%s2553_s2] sm:$0x7]  ;;  %v148_v14 = vsub.s32 1, %v2069_v11  ;;  %s2012_s2 = smov [#allocation8]  }
  0x3c   :  { %s1448_s7 = sshll.u32 %s2012_s2, 4  ;;  %s1449_s7 = int_to_ptr.vmem [resolvable:$true] %s1448_s7 }
  0x3d   :  { %s1978_s8 = scalar_lea.vmem %s1449_s7, 4096  ;;  %p1983_p2 = scmp.lt.s32.totalorder %s1449_s7, %s1449_s7 }
  0x3e   :  { %296 = vmatpush1.bf16.msra.mxu0 %v1775_v15  ;;  %1582 = vmatpush3.bf16.msra.mxu1 %v1786_v24  ;;  %p1979_p1 = scmp.ne.s32.totalorder %s1449_s7, %s1978_s8  ;;  %p1984_p3 = scmp.lt.s32.totalorder %s1978_s8, %s1978_s8 }
  0x3f   :  { %297 = vmatprep.subr.bf16.mxu0 %v1776_v16  ;;  %1583 = vmatprep.subr.bf16.mxu1 %v1787_v27 }
  0x40   :  { %p1985_p4 = por %p1984_p3, %p1983_p2 }
  0x42   :  { %298 = vmatpush1.bf16.msra.mxu0 %v1778_v18  ;;  %1584 = vmatpush3.bf16.msra.mxu1 %v1787_v27  ;;  %p1986_p5 = pnand %p1985_p4, %p1979_p1 }
  0x43   :  { %299 = vmatprep.subr.bf16.mxu0 %v1779_v20  ;;  %1585 = vmatprep.subr.bf16.mxu1 %v1788_v29 }
  0x46   :  { %300 = vmatpush1.bf16.msra.mxu0 %v1781_v22  ;;  %1586 = vmatpush3.bf16.msra.mxu1 %v1788_v29 }
  0x47   :  { %1587 = vmatprep.subr.bf16.mxu1 %v1789_v32 }
  0x49   :  { %318 = vmatmul.mubr.bf16.vlgmr.msra.gmra.mxu0 %v92_v12  ;;  %v144_v12 = vsub.s32 0, %v2069_v11 }
  0x4a   :  { %327 = vmatprep.mubr.bf16.mxu0 %v2011_v0  ;;  %1588 = vmatpush3.bf16.msra.mxu1 %v1789_v32 }
  0x4b   :  { %v2079_v16 = vrot.slane %v2075_v13, %v144_v12 }
  0x4d   :  { %1590 = vmatmul.mubr.bf16.vlgmr.msra.gmra.mxu1 %v93_v28 }
  0x4e   :  { %1593 = vmatprep.mubr.bf16.mxu1 %v94_v33 }
  0x51   :  { %328 = vmatmul.mubr.bf16.gmra.mxu0 %v93_v28 }
  0x52   :  { %337 = vmatprep.mubr.bf16.mxu0 %v2011_v0 }
  0x55   :  { %1594 = vmatmul.mubr.bf16.gmra.mxu1 %v95_v36 }
  0x56   :  { %1597 = vmatprep.mubr.bf16.mxu1 %v96_v39 }
  0x59   :  { %338 = vmatmul.mubr.bf16.gmra.mxu0 %v94_v33 }
  0x5a   :  { %347 = vmatprep.mubr.bf16.mxu0 %v2011_v0 }
  0x5d   :  { %1598 = vmatmul.mubr.bf16.gmra.mxu1 %v97_v44 }
  0x5e   :  { %1601 = vmatprep.mubr.bf16.mxu1 %v98_v45 }
  0x61   :  { %348 = vmatmul.mubr.bf16.gmra.mxu0 %v95_v36 }
  0x62   :  { %357 = vmatprep.mubr.bf16.mxu0 %v2011_v0 }
  0x65   :  { %1602 = vmatmul.mubr.bf16.gmra.mxu1 %v99_v50 }
  0x66   :  { %1605 = vmatprep.mubr.bf16.mxu1 %v100_v51 }
  0x69   :  { %358 = vmatmul.mubr.bf16.gmra.mxu0 %v96_v39 }
  0x6a   :  { %367 = vmatprep.mubr.bf16.mxu0 %v2011_v0 }
  0x6d   :  { %1606 = vmatmul.mubr.bf16.gmra.mxu1 %v101_v56 }
  0x6e   :  { %1609 = vmatprep.mubr.bf16.mxu1 %v102_v57 }
  0x71   :  { %368 = vmatmul.mubr.bf16.gmra.mxu0 %v97_v44 }
  0x72   :  { %377 = vmatprep.mubr.bf16.mxu0 %v2011_v0 }
  0x75   :  { %1610 = vmatmul.mubr.bf16.gmra.mxu1 %v103_v62 }
  0x76   :  { %1613 = vmatprep.mubr.bf16.mxu1 %v104_v63 }
  0x79   :  { %378 = vmatmul.mubr.bf16.gmra.mxu0 %v98_v45 }
  0x7a   :  { %387 = vmatprep.mubr.bf16.mxu0 %v2011_v0 }
  0x7d   :  { %1614 = vmatmul.mubr.bf16.gmra.mxu1 %v105_v5 }
  0x7e   :  { %1617 = vmatprep.mubr.bf16.mxu1 %v106_v6 }
  0x81   :  { %388 = vmatmul.mubr.bf16.gmra.mxu0 %v99_v50 }
  0x82   :  { %397 = vmatprep.mubr.bf16.mxu0 %v2011_v0 }
  0x85   :  { %1618 = vmatmul.mubr.bf16.gmra.mxu1 %v107_v9 }
  0x89   :  { %398 = vmatmul.mubr.bf16.gmra.mxu0 %v100_v51 }
  0x8a   :  { %407 = vmatprep.mubr.bf16.mxu0 %v2011_v0 }
  0x91   :  { %408 = vmatmul.mubr.bf16.gmra.mxu0 %v101_v56 }
  0x92   :  { %417 = vmatprep.mubr.bf16.mxu0 %v2011_v0 }
  0x99   :  { %418 = vmatmul.mubr.bf16.gmra.mxu0 %v102_v57 }
  0x9a   :  { %427 = vmatprep.mubr.bf16.mxu0 %v2011_v0 }
  0xa1   :  { %428 = vmatmul.mubr.bf16.gmra.mxu0 %v103_v62 }
  0xa2   :  { %437 = vmatprep.mubr.bf16.mxu0 %v2011_v0 }
  0xa9   :  { %438 = vmatmul.mubr.bf16.gmra.mxu0 %v104_v63 }
  0xaa   :  { %447 = vmatprep.mubr.bf16.mxu0 %v2011_v0 }
  0xb1   :  { %448 = vmatmul.mubr.bf16.gmra.mxu0 %v105_v5 }
  0xb2   :  { %457 = vmatprep.mubr.bf16.mxu0 %v2011_v0 }
  0xb9   :  { %458 = vmatmul.mubr.bf16.gmra.mxu0 %v106_v6 }
  0xba   :  { %467 = vmatprep.mubr.bf16.mxu0 %v2011_v0  ;;  %v2082_v0 = vrot.slane %v2075_v13, %v148_v14 }
  0xc1   :  { %468 = vmatmul.mubr.bf16.gmra.mxu0 %v107_v9 }
 0x109   :  { %v319_v15 = vpop.f32.mrf.mxu0 }
 0x10a   :  { %v320_v19 = vadd.f32 %v319_v15, %v2079_v16 }
 0x10b   :  { %v321_v17 = vpop.f32.mrf.mxu0 }
 0x10c   :  { %v322_v22 = vadd.f32 %v321_v17, %v2082_v0 }
 0x10d   :  { %v323_v18 = vpop.f32.mrf.mxu0 }
 0x10e   :  { %v324_v20 = vadd.f32 %v323_v18, %v2079_v16 }
 0x10f   :  { %v325_v21 = vpop.f32.mrf.mxu0 }
 0x110   :  { %v639_v23 = vpack.c.bf16 %v324_v20, %v320_v19  ;;  %v326_v24 = vadd.f32 %v325_v21, %v2082_v0 }
 0x111   :  { %v329_v25 = vpop.f32.mrf.mxu0 }
 0x112   :  { %v2088_v26 = vpack.c.bf16 %v326_v24, %v322_v22  ;;  %1637 = vmatprep.mubr.bf16.mxu1 %v639_v23  ;;  %v2091_v29 = vadd.f32 %v329_v25, %v2079_v16 }
 0x113   :  { %v331_v27 = vpop.f32.mrf.mxu0 }
 0x114   :  { %v332_v32 = vadd.f32 %v331_v27, %v2082_v0 }
 0x115   :  { %v333_v28 = vpop.f32.mrf.mxu0 }
 0x116   :  { %v2094_v30 = vadd.f32 %v333_v28, %v2079_v16 }
 0x117   :  { %v335_v31 = vpop.f32.mrf.mxu0 }
 0x118   :  { %v336_v34 = vadd.f32 %v335_v31, %v2082_v0 }
 0x119   :  { %v339_v35 = vpop.f32.mrf.mxu0 }
 0x11a   :  { %v2100_v36 = vpack.c.bf16 %v336_v34, %v332_v32  ;;  %v2103_v39 = vadd.f32 %v339_v35, %v2079_v16 }
 0x11b   :  { %v341_v37 = vpop.f32.mrf.mxu0 }
 0x11c   :  { %v342_v42 = vadd.f32 %v341_v37, %v2082_v0 }
 0x11d   :  { %v343_v38 = vpop.f32.mrf.mxu0 }
 0x11e   :  { %v2106_v40 = vadd.f32 %v343_v38, %v2079_v16 }
 0x11f   :  { %v345_v41 = vpop.f32.mrf.mxu0 }
 0x120   :  { %v346_v44 = vadd.f32 %v345_v41, %v2082_v0 }
 0x121   :  { %v349_v45 = vpop.f32.mrf.mxu0 }
 0x122   :  { %v2112_v46 = vpack.c.bf16 %v346_v44, %v342_v42  ;;  %v2117_v49 = vadd.f32 %v349_v45, %v2079_v16 }
 0x123   :  { %v2114_v47 = vpop.f32.mrf.mxu0 }
 0x125   :  { %v353_v48 = vpop.f32.mrf.mxu0 }
 0x126   :  { %v2120_v50 = vadd.f32 %v353_v48, %v2079_v16 }
 0x127   :  { %v2122_v51 = vpop.f32.mrf.mxu0 }
 0x129   :  { %v359_v53 = vpop.f32.mrf.mxu0 }
 0x12a   :  { %v2129_v56 = vadd.f32 %v359_v53, %v2079_v16 }
 0x12b   :  { %v2126_v54 = vpop.f32.mrf.mxu0 }
 0x12d   :  { %v363_v55 = vpop.f32.mrf.mxu0 }
 0x12e   :  { %v2132_v57 = vadd.f32 %v363_v55, %v2079_v16 }
 0x12f   :  { %v365_v58 = vpop.f32.mrf.mxu0 }
 0x131   :  { %v369_v60 = vpop.f32.mrf.mxu0 }
 0x132   :  { %v2137_v63 = vadd.f32 %v369_v60, %v2079_v16 }
 0x133   :  { %v371_v61 = vpop.f32.mrf.mxu0 }
 0x134   :  { %v372_v48 = vadd.f32 %v371_v61, %v2082_v0 }
 0x135   :  { %v373_v62 = vpop.f32.mrf.mxu0 }
 0x136   :  { %v2140_v1 = vadd.f32 %v373_v62, %v2079_v16 }
 0x137   :  { %v375_v2 = vpop.f32.mrf.mxu0 }
 0x138   :  { %v376_v38 = vadd.f32 %v375_v2, %v2082_v0 }
 0x139   :  { %v379_v4 = vpop.f32.mrf.mxu0 }
 0x13a   :  { %v2145_v7 = vadd.f32 %v379_v4, %v2079_v16  ;;  %v660_v60 = vpack.c.bf16 %v376_v38, %v372_v48 }
 0x13b   :  { %v381_v5 = vpop.f32.mrf.mxu0 }
 0x13c   :  { %v382_v25 = vadd.f32 %v381_v5, %v2082_v0 }
 0x13d   :  { %v383_v6 = vpop.f32.mrf.mxu0 }
 0x13e   :  { %v2148_v8 = vadd.f32 %v383_v6, %v2079_v16  ;;  %v366_v6 = vadd.f32 %v365_v58, %v2082_v0 }
 0x13f   :  { %v385_v9 = vpop.f32.mrf.mxu0 }
 0x140   :  { %v386_v20 = vadd.f32 %v385_v9, %v2082_v0 }
 0x141   :  { %v389_v12 = vpop.f32.mrf.mxu0 }
 0x142   :  { %v2153_v17 = vadd.f32 %v389_v12, %v2079_v16  ;;  %v661_v31 = vpack.c.bf16 %v386_v20, %v382_v25 }
 0x143   :  { %v391_v14 = vpop.f32.mrf.mxu0 }
 0x144   :  { %v392_v21 = vadd.f32 %v391_v14, %v2082_v0 }
 0x145   :  { %v393_v15 = vpop.f32.mrf.mxu0 }
 0x146   :  { %v2156_v18 = vadd.f32 %v393_v15, %v2079_v16  ;;  %v362_v15 = vadd.f32 %v2126_v54, %v2082_v0 }
 0x147   :  { %v395_v19 = vpop.f32.mrf.mxu0 }
 0x148   :  { %v396_v23 = vadd.f32 %v395_v19, %v2082_v0 }
 0x149   :  { %v399_v24 = vpop.f32.mrf.mxu0 }
 0x14a   :  { %v662_v27 = vpack.c.bf16 %v396_v23, %v392_v21  ;;  %v400_v34 = vadd.f32 %v399_v24, %v2079_v16  ;;  %v659_v21 = vpack.c.bf16 %v366_v6, %v362_v15 }
 0x14b   :  { %v401_v28 = vpop.f32.mrf.mxu0 }
 0x14c   :  { %1621 = vmatprep.subr.bf16.mxu1 %v662_v27  ;;  %v402_v41 = vadd.f32 %v401_v28, %v2082_v0 }
 0x14d   :  { %v403_v32 = vpop.f32.mrf.mxu0  ;;  %1622 = vmatpush3.bf16.xpose.msra.mxu1 %v662_v27  ;;  %v356_v27 = vadd.f32 %v2122_v51, %v2082_v0 }
 0x14e   :  { %v404_v35 = vadd.f32 %v403_v32, %v2079_v16  ;;  %1623 = vmatprep.subr.bf16.mxu1 %v661_v31 }
 0x14f   :  { %v405_v37 = vpop.f32.mrf.mxu0 }
 0x150   :  { %v647_v42 = vpack.c.bf16 %v404_v35, %v400_v34  ;;  %v406_v44 = vadd.f32 %v405_v37, %v2082_v0  ;;  %v352_v34 = vadd.f32 %v2114_v47, %v2082_v0 }
 0x151   :  { %v409_v45 = vpop.f32.mrf.mxu0 }
 0x152   :  { %v2170_v53 = vpack.c.bf16 %v406_v44, %v402_v41  ;;  %1669 = vmatprep.mubr.bf16.mxu0 %v647_v42  ;;  %v2173_v4 = vadd.f32 %v409_v45, %v2079_v16  ;;  %v658_v38 = vpack.c.bf16 %v356_v27, %v352_v34  ;;  %v2205_v41 = vpop.f32.mrf.mxu1 }
 0x153   :  { %v411_v55 = vpop.f32.mrf.mxu0 }
 0x154   :  { %v412_v9 = vadd.f32 %v411_v55, %v2082_v0  ;;  %v2213_v45 = vpop.f32.mrf.mxu1 }
 0x155   :  { %v413_v62 = vpop.f32.mrf.mxu0  ;;  %1624 = vmatpush3.bf16.xpose.msra.mxu1 %v661_v31 }
 0x156   :  { %v2176_v2 = vadd.f32 %v413_v62, %v2079_v16  ;;  %1625 = vmatprep.subr.bf16.mxu1 %v660_v60  ;;  %v2219_v55 = vpop.f32.mrf.mxu1 }
 0x157   :  { %v415_v5 = vpop.f32.mrf.mxu0 }
 0x158   :  { %v416_v12 = vadd.f32 %v415_v5, %v2082_v0  ;;  %v2221_v62 = vpop.f32.mrf.mxu1 }
 0x159   :  { %v419_v14 = vpop.f32.mrf.mxu0 }
 0x15a   :  { %v2185_v19 = vpack.c.bf16 %v416_v12, %v412_v9  ;;  %v2188_v24 = vadd.f32 %v419_v14, %v2079_v16  ;;  %v2225_v6 = vpop.f32.mrf.mxu1 }
 0x15b   :  { %v421_v20 = vpop.f32.mrf.mxu0 }
 0x15c   :  { %2565 = vst [vmem:[#allocation12_spill] sm:$0xff] %v2188_v24  ;;  %v422_v28 = vadd.f32 %v421_v20, %v2082_v0  ;;  %v2234_v15 = vpop.f32.mrf.mxu1 }
 0x15d   :  { %v423_v23 = vpop.f32.mrf.mxu0  ;;  %1626 = vmatpush3.bf16.xpose.msra.mxu1 %v660_v60 }
 0x15e   :  { %v2191_v58 = vadd.f32 %v423_v23, %v2079_v16  ;;  %1627 = vmatprep.subr.bf16.mxu1 %v659_v21  ;;  %v2240_v23 = vpop.f32.mrf.mxu1 }
 0x15f   :  { %v425_v25 = vpop.f32.mrf.mxu0 }
 0x160   :  { %v426_v31 = vadd.f32 %v425_v25, %v2082_v0  ;;  %v2242_v27 = vpop.f32.mrf.mxu1 }
 0x161   :  { %v429_v32 = vpop.f32.mrf.mxu0 }
 0x162   :  { %v2201_v35 = vpack.c.bf16 %v426_v31, %v422_v28  ;;  %v2208_v51 = vadd.f32 %v429_v32, %v2079_v16  ;;  %v1599_v31 = vpop.f32.mrf.mxu1 }
 0x163   :  { %v2203_v37 = vpop.f32.mrf.mxu0 }
 0x164   :  { %2566 = vst [vmem:[#allocation13_spill] sm:$0xff] %v2208_v51 }
 0x165   :  { %v433_v42 = vpop.f32.mrf.mxu0  ;;  %1628 = vmatpush3.bf16.xpose.msra.mxu1 %v659_v21 }
 0x166   :  { %v2211_v44 = vadd.f32 %v433_v42, %v2079_v16  ;;  %1629 = vmatprep.subr.bf16.mxu1 %v658_v38  ;;  %v544_v42 = vpop.f32.mrf.mxu1 }
 0x167   :  { %v2215_v48 = vpop.f32.mrf.mxu0 }
 0x168   :  { %2567 = vst [vmem:[#allocation14_spill] sm:$0xff] %v2211_v44  ;;  %v1600_v47 = vpop.f32.mrf.mxu1 }
 0x169   :  { %v439_v60 = vpop.f32.mrf.mxu0 }
 0x16a   :  { %v2228_v12 = vadd.f32 %v439_v60, %v2079_v16  ;;  %v547_v61 = vpop.f32.mrf.mxu1 }
 0x16b   :  { %v2223_v5 = vpop.f32.mrf.mxu0 }
 0x16c   :  { %2568 = vst [vmem:[#allocation15_spill] sm:$0xff] %v2228_v12  ;;  %v1603_v22 = vpop.f32.mrf.mxu1 }
 0x16d   :  { %v443_v9 = vpop.f32.mrf.mxu0  ;;  %1630 = vmatpush3.bf16.xpose.msra.mxu1 %v658_v38 }
 0x16e   :  { %v2231_v14 = vadd.f32 %v443_v9, %v2079_v16  ;;  %1631 = vmatprep.subr.bf16.mxu1 %v2112_v46  ;;  %v152_v9 = vsub.s32 2, %v2069_v11  ;;  %v560_v11 = vpop.f32.mrf.mxu1 }
 0x16f   :  { %v2236_v20 = vpop.f32.mrf.mxu0 }
 0x170   :  { %2569 = vst [vmem:[#allocation16_spill] sm:$0xff] %v2231_v14 }
 0x171   :  { %v449_v25 = vpop.f32.mrf.mxu0 }
 0x172   :  { %v2248_v34 = vadd.f32 %v449_v25, %v2079_v16  ;;  %v2260_v25 = vrot.slane %v2075_v13, %v152_v9  ;;  %v1604_v9 = vpop.f32.mrf.mxu1 }
 0x173   :  { %v2244_v28 = vpop.f32.mrf.mxu0 }
 0x174   :  { %2570 = vst [vmem:[#allocation17_spill] sm:$0xff] %v2248_v34  ;;  %v569_v59 = vadd.f32 %v1603_v22, %v2260_v25  ;;  %v572_v43 = vadd.f32 %v1604_v9, %v2260_v25  ;;  %v561_v9 = vadd.f32 %v560_v11, %v2260_v25  ;;  %v553_v11 = vadd.f32 %v1599_v31, %v2260_v25 }
 0x175   :  { %v453_v32 = vpop.f32.mrf.mxu0  ;;  %1632 = vmatpush3.bf16.xpose.msra.mxu1 %v2112_v46 }
 0x176   :  { %v2251_v38 = vadd.f32 %v453_v32, %v2079_v16  ;;  %1633 = vmatprep.subr.bf16.mxu1 %v2100_v36 }
 0x177   :  { %v2254_v60 = vpop.f32.mrf.mxu0 }
 0x178   :  { %2571 = vst [vmem:[#allocation18_spill] sm:$0xff] %v2251_v38 }
 0x179   :  { %v459_v54 = vpop.f32.mrf.mxu0 }
 0x17a   :  { %v2264_v10 = vadd.f32 %v459_v54, %v2079_v16  ;;  %v1176_v54 = vpack.c.bf16 %v572_v43, %v569_v59 }
 0x17b   :  { %v461_v46 = vpop.f32.mrf.mxu0 }
 0x17c   :  { %2572 = vst [vmem:[#allocation19_spill] sm:$0xff] %v2264_v10  ;;  %v462_v14 = vadd.f32 %v461_v46, %v2082_v0  ;;  %v2575_v46 = vpack.c.bf16 %v2106_v40, %v2103_v39  ;;  %v456_v39 = vadd.f32 %v2254_v60, %v2082_v0 }
 0x17d   :  { %v463_v32 = vpop.f32.mrf.mxu0  ;;  %1634 = vmatpush3.bf16.xpose.msra.mxu1 %v2100_v36  ;;  %v563_v36 = vpop.f32.mrf.mxu1 }
 0x17e   :  { %v2267_v3 = vadd.f32 %v463_v32, %v2079_v16  ;;  %1635 = vmatprep.subr.bf16.mxu1 %v2088_v26 }
 0x17f   :  { %v465_v21 = vpop.f32.mrf.mxu0  ;;  %v1607_v34 = vpop.f32.mrf.mxu1 }
 0x180   :  { %2573 = vst [vmem:[#allocation20_spill] sm:$0xff] %v2267_v3  ;;  %v585_v32 = vadd.f32 %v1607_v34, %v2260_v25  ;;  %v564_v3 = vadd.f32 %v563_v36, %v2260_v25  ;;  %v466_v59 = vadd.f32 %v465_v21, %v2082_v0 }
 0x181   :  { %v469_v52 = vpop.f32.mrf.mxu0  ;;  %v576_v13 = vpop.f32.mrf.mxu1 }
 0x182   :  { %v2277_v12 = vadd.f32 %v469_v52, %v2079_v16  ;;  %v577_v43 = vadd.f32 %v576_v13, %v2260_v25  ;;  %v556_v13 = vadd.f32 %v1600_v47, %v2260_v25  ;;  %v1175_v44 = vpack.c.bf16 %v564_v3, %v561_v9 }
 0x183   :  { %v471_v33 = vpop.f32.mrf.mxu0  ;;  %v669_v24 = vpack.c.bf16 %v466_v59, %v462_v14  ;;  %v545_v14 = vadd.f32 %v544_v42, %v2260_v25  ;;  %v452_v9 = vadd.f32 %v2244_v28, %v2082_v0 }
 0x185   :  { %v473_v38 = vpop.f32.mrf.mxu0  ;;  %1636 = vmatpush3.bf16.xpose.msra.mxu1 %v2088_v26  ;;  %v472_v26 = vadd.f32 %v471_v33, %v2082_v0  ;;  %v668_v60 = vpack.c.bf16 %v456_v39, %v452_v9  ;;  %v2580_v9 = vpack.c.bf16 %v2156_v18, %v2153_v17  ;;  %v2581_v17 = vpack.c.bf16 %v2176_v2, %v2173_v4  ;;  %v2582_v18 = vld [vmem:[#allocation12_spill] sm:$0xff]  ;;  %v673_v2 = vld [vmem:[#allocation7 + $0x10] sm:$0xff] }
 0x186   :  { %v2280_v22 = vadd.f32 %v473_v38, %v2079_v16  ;;  %1685 = vmatprep.subr.bf16.mxu1 %v1176_v54  ;;  %v1608_v16 = vpop.f32.mrf.mxu1 }
 0x187   :  { %v475_v10 = vpop.f32.mrf.mxu0  ;;  %v588_v38 = vadd.f32 %v1608_v16, %v2260_v25 }
 0x188   :  { %v654_v52 = vpack.c.bf16 %v2280_v22, %v2277_v12  ;;  %v476_v34 = vadd.f32 %v475_v10, %v2082_v0  ;;  %v579_v36 = vpop.f32.mrf.mxu1  ;;  %v2574_v10 = vpack.c.bf16 %v2094_v30, %v2091_v29  ;;  %v548_v29 = vadd.f32 %v547_v61, %v2260_v25 }
 0x189   :  { %v2294_v21 = vpack.c.bf16 %v588_v38, %v585_v32  ;;  %v580_v33 = vadd.f32 %v579_v36, %v2260_v25  ;;  %v1174_v32 = vpack.c.bf16 %v556_v13, %v553_v11  ;;  %v540_v61 = vadd.f32 %v2240_v23, %v2260_v25 }
 0x18a   :  { %v670_v51 = vpack.c.bf16 %v476_v34, %v472_v26  ;;  %v1611_v16 = vpop.f32.mrf.mxu1  ;;  %v1173_v42 = vpack.c.bf16 %v548_v29, %v545_v14  ;;  %v2576_v34 = vpack.c.bf16 %v2120_v50, %v2117_v49  ;;  %v529_v11 = vadd.f32 %v2234_v15, %v2260_v25 }
 0x18b   :  { %v2303_v31 = vpack.c.bf16 %v580_v33, %v577_v43  ;;  %v601_v3 = vadd.f32 %v1611_v16, %v2260_v25  ;;  %v532_v49 = vadd.f32 %v2242_v27, %v2260_v25  ;;  %v442_v13 = vadd.f32 %v2223_v5, %v2082_v0 }
 0x18c   :  { %1638 = vmatmul.mubr.bf16.vlgmr.msra.gmra.mxu1 %v2574_v10  ;;  %1653 = vmatprep.subr.bf16.mxu0 %v670_v51  ;;  %v592_v47 = vpop.f32.mrf.mxu1  ;;  %v521_v33 = vadd.f32 %v2205_v41, %v2260_v25  ;;  %v524_v27 = vadd.f32 %v2219_v55, %v2260_v25  ;;  %v2579_v41 = vpack.c.bf16 %v2148_v8, %v2145_v7 }
 0x18d   :  { %1641 = vmatprep.mubr.bf16.mxu1 %v2575_v46  ;;  %1654 = vmatpush3.bf16.xpose.msra.mxu0 %v670_v51  ;;  %v593_v30 = vadd.f32 %v592_v47, %v2260_v25  ;;  %v1171_v10 = vpack.c.bf16 %v532_v49, %v529_v11  ;;  %v513_v14 = vadd.f32 %v2213_v45, %v2260_v25  ;;  %v672_v49 = vld [vmem:[#allocation7 + $0x8] sm:$0xff] }
 0x18e   :  { %1655 = vmatprep.subr.bf16.mxu0 %v669_v24  ;;  %1686 = vmatpush3.bf16.msra.mxu1 %v1176_v54  ;;  %v1612_v40 = vpop.f32.mrf.mxu1  ;;  %v537_v54 = vadd.f32 %v2225_v6, %v2260_v25  ;;  %v2577_v6 = vpack.c.bf16 %v2132_v57, %v2129_v56  ;;  %v446_v56 = vadd.f32 %v2236_v20, %v2082_v0 }
 0x18f   :  { %1687 = vmatprep.subr.bf16.mxu1 %v1175_v44  ;;  %v604_v51 = vadd.f32 %v1612_v40, %v2260_v25  ;;  %v516_v29 = vadd.f32 %v2221_v62, %v2260_v25  ;;  %v432_v8 = vadd.f32 %v2203_v37, %v2082_v0  ;;  %v2583_v37 = vpack.c.bf16 %v2191_v58, %v2582_v18  ;;  %v684_v18 = vld [vmem:[#allocation7 + $0x68] sm:$0xff] }
 0x190   :  { %v595_v43 = vpop.f32.mrf.mxu1  ;;  %v1172_v36 = vpack.c.bf16 %v540_v61, %v537_v54  ;;  %v667_v20 = vpack.c.bf16 %v446_v56, %v442_v13  ;;  %v2585_v54 = vld [vmem:[#allocation13_spill] sm:$0xff]  ;;  %v2588_v61 = vld [vmem:[#allocation15_spill] sm:$0xff]  ;;  %v677_v13 = vld [vmem:[#allocation7 + $0x30] sm:$0xff] }
 0x191   :  { %v2318_v59 = vpack.c.bf16 %v604_v51, %v601_v3  ;;  %v596_v26 = vadd.f32 %v595_v43, %v2260_v25  ;;  %v2578_v3 = vpack.c.bf16 %v2140_v1, %v2137_v63  ;;  %v436_v1 = vadd.f32 %v2215_v48, %v2082_v0 }
 0x192   :  { %1688 = vmatpush3.bf16.msra.mxu1 %v1175_v44  ;;  %v1615_v28 = vpop.f32.mrf.mxu1  ;;  %v1169_v39 = vpack.c.bf16 %v516_v29, %v513_v14 }
 0x193   :  { %1689 = vmatprep.subr.bf16.mxu1 %v1174_v32  ;;  %v2327_v44 = vpack.c.bf16 %v596_v26, %v593_v30  ;;  %v617_v23 = vadd.f32 %v1615_v28, %v2260_v25  ;;  %v666_v62 = vpack.c.bf16 %v436_v1, %v432_v8  ;;  %v2591_v26 = vld [vmem:[#allocation17_spill] sm:$0xff]  ;;  %v671_v28 = vld [vmem:[#allocation7] sm:$0xff] }
 0x194   :  { %1642 = vmatmul.mubr.bf16.gmra.mxu1 %v2576_v34  ;;  %v608_v38 = vpop.f32.mrf.mxu1  ;;  %v2594_v34 = vld [vmem:[#allocation19_spill] sm:$0xff] }
 0x195   :  { %1645 = vmatprep.mubr.bf16.mxu1 %v2577_v6  ;;  %1656 = vmatpush3.bf16.xpose.msra.mxu0 %v669_v24  ;;  %v609_v50 = vadd.f32 %v608_v38, %v2260_v25  ;;  %v674_v38 = vld [vmem:[#allocation7 + $0x18] sm:$0xff] }
 0x196   :  { %1657 = vmatprep.subr.bf16.mxu0 %v668_v60  ;;  %1690 = vmatpush3.bf16.msra.mxu1 %v1174_v32  ;;  %v1616_v57 = vpop.f32.mrf.mxu1  ;;  %v1170_v32 = vpack.c.bf16 %v524_v27, %v521_v33 }
 0x197   :  { %1691 = vmatprep.subr.bf16.mxu1 %v1173_v42  ;;  %v620_v24 = vadd.f32 %v1616_v57, %v2260_v25 }
 0x198   :  { %v611_v15 = vpop.f32.mrf.mxu1 }
 0x199   :  { %v2344_v16 = vpack.c.bf16 %v620_v24, %v617_v23  ;;  %v612_v46 = vadd.f32 %v611_v15, %v2260_v25  ;;  %v676_v15 = vld [vmem:[#allocation7 + $0x28] sm:$0xff] }
 0x19a   :  { %1692 = vmatpush3.bf16.msra.mxu1 %v1173_v42  ;;  %v1619_v5 = vpop.f32.mrf.mxu1 }
 0x19b   :  { %1693 = vmatprep.subr.bf16.mxu1 %v1172_v36  ;;  %v2353_v47 = vpack.c.bf16 %v612_v46, %v609_v50  ;;  %v633_v40 = vadd.f32 %v1619_v5, %v2260_v25  ;;  %v679_v5 = vld [vmem:[#allocation7 + $0x40] sm:$0xff] }
 0x19c   :  { %1646 = vmatmul.mubr.bf16.gmra.mxu1 %v2578_v3  ;;  %v624_v55 = vpop.f32.mrf.mxu1 }
 0x19d   :  { %1649 = vmatprep.mubr.bf16.mxu1 %v2579_v41  ;;  %1658 = vmatpush3.bf16.xpose.msra.mxu0 %v668_v60  ;;  %v625_v63 = vadd.f32 %v624_v55, %v2260_v25 }
 0x19e   :  { %1659 = vmatprep.subr.bf16.mxu0 %v667_v20  ;;  %1694 = vmatpush3.bf16.msra.mxu1 %v1172_v36  ;;  %v1620_v7 = vpop.f32.mrf.mxu1 }
 0x19f   :  { %1695 = vmatprep.subr.bf16.mxu1 %v1171_v10  ;;  %v636_v45 = vadd.f32 %v1620_v7, %v2260_v25 }
 0x1a0   :  { %v627_v30 = vpop.f32.mrf.mxu1 }
 0x1a1   :  { %v628_v51 = vadd.f32 %v627_v30, %v2260_v25  ;;  %v2372_v0 = vpack.c.bf16 %v636_v45, %v633_v40  ;;  %v2584_v25 = vld [vmem:[#allocation14_spill] sm:$0xff]  ;;  %v682_v30 = vld [vmem:[#allocation7 + $0x58] sm:$0xff]  ;;  %v683_v40 = vld [vmem:[#allocation7 + $0x60] sm:$0xff] }
 0x1a2   :  { %1696 = vmatpush3.bf16.msra.mxu1 %v1171_v10  ;;  %v2586_v43 = vpack.c.bf16 %v2584_v25, %v2585_v54 }
 0x1a3   :  { %1697 = vmatprep.subr.bf16.mxu1 %v1170_v32  ;;  %v2370_v48 = vpack.c.bf16 %v628_v51, %v625_v63  ;;  %v680_v63 = vld [vmem:[#allocation7 + $0x48] sm:$0xff] }
 0x1a4   :  { %1650 = vmatmul.mubr.bf16.gmra.mxu1 %v2580_v9  ;;  %v685_v9 = vld [vmem:[#allocation7 + $0x70] sm:$0xff] }
 0x1a5   :  { %1660 = vmatpush3.bf16.xpose.msra.mxu0 %v667_v20  ;;  %v678_v20 = vld [vmem:[#allocation7 + $0x38] sm:$0xff] }
 0x1a6   :  { %1661 = vmatprep.subr.bf16.mxu0 %v666_v62  ;;  %1698 = vmatpush3.bf16.msra.mxu1 %v1170_v32  ;;  %v681_v32 = vld [vmem:[#allocation7 + $0x50] sm:$0xff] }
 0x1a7   :  { %1699 = vmatprep.subr.bf16.mxu1 %v1169_v39 }
 0x1aa   :  { %1700 = vmatpush3.bf16.msra.mxu1 %v1169_v39 }
 0x1ab   :  { %1717 = vmatprep.subr.bf16.mxu1 %v2372_v0 }
 0x1ad   :  { %1662 = vmatpush3.bf16.xpose.msra.mxu0 %v666_v62 }
 0x1ae   :  { %1663 = vmatprep.subr.bf16.mxu0 %v2201_v35 }
 0x1b5   :  { %1664 = vmatpush3.bf16.xpose.msra.mxu0 %v2201_v35  ;;  %v2587_v35 = vld [vmem:[#allocation16_spill] sm:$0xff] }
 0x1b6   :  { %1665 = vmatprep.subr.bf16.mxu0 %v2185_v19  ;;  %v2589_v42 = vpack.c.bf16 %v2587_v35, %v2588_v61 }
 0x1bd   :  { %1666 = vmatpush3.bf16.xpose.msra.mxu0 %v2185_v19  ;;  %v2590_v19 = vld [vmem:[#allocation18_spill] sm:$0xff] }
 0x1be   :  { %1667 = vmatprep.subr.bf16.mxu0 %v2170_v53  ;;  %v2592_v60 = vpack.c.bf16 %v2590_v19, %v2591_v26 }
 0x1c5   :  { %1668 = vmatpush3.bf16.xpose.msra.mxu0 %v2170_v53  ;;  %v2593_v53 = vld [vmem:[#allocation20_spill] sm:$0xff] }
 0x1c6   :  { %v2595_v4 = vpack.c.bf16 %v2593_v53, %v2594_v34  ;;  %v688_v34 = vld [vmem:[#allocation7 + $0x88] sm:$0xff] }
 0x1cc   :  { %1670 = vmatmul.mubr.bf16.vlgmr.msra.gmra.mxu0 %v2581_v17 }
 0x1cd   :  { %1673 = vmatprep.mubr.bf16.mxu0 %v2583_v37 }
 0x1d4   :  { %1674 = vmatmul.mubr.bf16.gmra.mxu0 %v2586_v43  ;;  %v686_v43 = vld [vmem:[#allocation7 + $0x78] sm:$0xff] }
 0x1d5   :  { %1677 = vmatprep.mubr.bf16.mxu0 %v2589_v42  ;;  %v687_v42 = vld [vmem:[#allocation7 + $0x80] sm:$0xff] }
 0x1dc   :  { %1678 = vmatmul.mubr.bf16.gmra.mxu0 %v2592_v60  ;;  %v689_v60 = vld [vmem:[#allocation7 + $0x90] sm:$0xff] }
 0x1dd   :  { %1681 = vmatprep.mubr.bf16.mxu0 %v2595_v4 }
 0x1e4   :  { %1682 = vmatmul.mubr.bf16.gmra.mxu0 %v654_v52  ;;  %v675_v52 = vld [vmem:[#allocation7 + $0x20] sm:$0xff] }
 0x24c   :  { %v1639_v58 = vpop.f32.mrf.mxu1 }
 0x24d   :  { %v2402_v6 = vadd.f32 %v1639_v58, %v673_v2 }
 0x24e   :  { %v737_v23 = vpop.f32.mrf.mxu1 }
 0x24f   :  { %v2404_v11 = vadd.f32 %v737_v23, %v671_v28  ;;  %901 = vmax.xlane.f32.xlu1 %v2402_v6  ;;  %v690_v28 = vld [vmem:[#allocation7 + $0x98] sm:$0xff] }
 0x250   :  { %v1640_v36 = vpop.f32.mrf.mxu1 }
 0x251   :  { %v2407_v50 = vadd.f32 %v1640_v36, %v674_v38  ;;  %897 = vmax.xlane.f32.xlu0 %v2404_v11  ;;  %v691_v38 = vld [vmem:[#allocation7 + $0xa0] sm:$0xff] }
 0x252   :  { %v740_v56 = vpop.f32.mrf.mxu1 }
 0x253   :  { %v2410_v12 = vadd.f32 %v740_v56, %v672_v49  ;;  %903 = vmax.xlane.f32.xlu1 %v2407_v50 }
 0x254   :  { %v1643_v22 = vpop.f32.mrf.mxu1 }
 0x255   :  { %899 = vmax.xlane.f32.xlu0 %v2410_v12  ;;  %v2417_v10 = vadd.f32 %v1643_v22, %v677_v13  ;;  %v693_v22 = vld [vmem:[#allocation7 + $0xb0] sm:$0xff] }
 0x256   :  { %v753_v57 = vpop.f32.mrf.mxu1 }
 0x257   :  { %v2414_v24 = vadd.f32 %v753_v57, %v675_v52  ;;  %v692_v57 = vld [vmem:[#allocation7 + $0xa8] sm:$0xff] }
 0x258   :  { %v1644_v33 = vpop.f32.mrf.mxu1 }
 0x259   :  { %905 = vmax.xlane.f32.xlu0 %v2414_v24  ;;  %v2423_v55 = vadd.f32 %v1644_v33, %v678_v20 }
 0x25a   :  { %v756_v27 = vpop.f32.mrf.mxu1 }
 0x25b   :  { %v2419_v46 = vadd.f32 %v756_v27, %v676_v15  ;;  %v694_v27 = vld [vmem:[#allocation7 + $0xb8] sm:$0xff] }
 0x25c   :  { %v1647_v3 = vpop.f32.mrf.mxu1 }
 0x25d   :  { %907 = vmax.xlane.f32.xlu1 %v2419_v46  ;;  %909 = vmax.xlane.f32.xlu0 %v2417_v10  ;;  %v2429_v7 = vadd.f32 %v1647_v3, %v681_v32  ;;  %v695_v3 = vld [vmem:[#allocation7 + $0xc0] sm:$0xff] }
 0x25e   :  { %v769_v41 = vpop.f32.mrf.mxu1 }
 0x25f   :  { %v2425_v14 = vadd.f32 %v769_v41, %v679_v5 }
 0x260   :  { %v1648_v29 = vpop.f32.mrf.mxu1 }
 0x261   :  { %911 = vmax.xlane.f32.xlu1 %v2423_v55  ;;  %913 = vmax.xlane.f32.xlu0 %v2425_v14  ;;  %v2435_v51 = vadd.f32 %v1648_v29, %v682_v30  ;;  %v697_v29 = vld [vmem:[#allocation7 + $0xd0] sm:$0xff] }
 0x262   :  { %v772_v1 = vpop.f32.mrf.mxu1 }
 0x263   :  { %v2431_v8 = vadd.f32 %v772_v1, %v680_v63  ;;  %v696_v1 = vld [vmem:[#allocation7 + $0xc8] sm:$0xff] }
 0x264   :  { %v1651_v39 = vpop.f32.mrf.mxu1 }
 0x265   :  { %915 = vmax.xlane.f32.xlu1 %v2431_v8  ;;  %917 = vmax.xlane.f32.xlu0 %v2429_v7  ;;  %v2441_v25 = vadd.f32 %v1651_v39, %v685_v9 }
 0x266   :  { %v785_v45 = vpop.f32.mrf.mxu1 }
 0x267   :  { %v2437_v62 = vadd.f32 %v785_v45, %v683_v40  ;;  %v698_v45 = vld [vmem:[#allocation7 + $0xd8] sm:$0xff] }
 0x268   :  { %v1652_v17 = vpop.f32.mrf.mxu1 }
 0x269   :  { %919 = vmax.xlane.f32.xlu1 %v2435_v51  ;;  %921 = vmax.xlane.f32.xlu0 %v2437_v62  ;;  %v2447_v35 = vadd.f32 %v1652_v17, %v686_v43  ;;  %v699_v17 = vld [vmem:[#allocation7 + $0xe0] sm:$0xff] }
 0x26a   :  { %v788_v37 = vpop.f32.mrf.mxu1 }
 0x26b   :  { %v2443_v54 = vadd.f32 %v788_v37, %v684_v18 }
 0x26d   :  { %923 = vmax.xlane.f32.xlu1 %v2443_v54  ;;  %925 = vmax.xlane.f32.xlu0 %v2441_v25 }
 0x271   :  { %927 = vmax.xlane.f32.xlu1 %v2447_v35 }
 0x28c   :  { %v1671_v61 = vpop.f32.mrf.mxu0 }
 0x28d   :  { %v2453_v2 = vadd.f32 %v1671_v61, %v689_v60  ;;  %v701_v61 = vld [vmem:[#allocation7 + $0xf0] sm:$0xff] }
 0x28e   :  { %v834_v19 = vpop.f32.mrf.mxu0 }
 0x28f   :  { %v2450_v26 = vadd.f32 %v834_v19, %v687_v42  ;;  %v700_v19 = vld [vmem:[#allocation7 + $0xe8] sm:$0xff] }
 0x290   :  { %v1672_v53 = vpop.f32.mrf.mxu0 }
 0x291   :  { %929 = vmax.xlane.f32.xlu0 %v2450_v26  ;;  %v2459_v49 = vadd.f32 %v1672_v53, %v690_v28 }
 0x292   :  { %v837_v4 = vpop.f32.mrf.mxu0 }
 0x293   :  { %v2455_v58 = vadd.f32 %v837_v4, %v688_v34  ;;  %v702_v4 = vld [vmem:[#allocation7 + $0xf8] sm:$0xff] }
 0x294   :  { %v1675_v23 = vpop.f32.mrf.mxu0 }
 0x295   :  { %931 = vmax.xlane.f32.xlu1 %v2455_v58  ;;  %933 = vmax.xlane.f32.xlu0 %v2453_v2  ;;  %v2465_v33 = vadd.f32 %v1675_v23, %v693_v22 }
 0x296   :  { %v850_v36 = vpop.f32.mrf.mxu0 }
 0x297   :  { %v2461_v56 = vadd.f32 %v850_v36, %v691_v38 }
 0x298   :  { %v1676_v52 = vpop.f32.mrf.mxu0 }
 0x299   :  { %935 = vmax.xlane.f32.xlu1 %v2459_v49  ;;  %937 = vmax.xlane.f32.xlu0 %v2461_v56  ;;  %v2471_v41 = vadd.f32 %v1676_v52, %v694_v27 }
 0x29a   :  { %v853_v13 = vpop.f32.mrf.mxu0 }
 0x29b   :  { %v2467_v15 = vadd.f32 %v853_v13, %v692_v57 }
 0x29c   :  { %v1679_v20 = vpop.f32.mrf.mxu0 }
 0x29d   :  { %939 = vmax.xlane.f32.xlu1 %v2467_v15  ;;  %941 = vmax.xlane.f32.xlu0 %v2465_v33  ;;  %v2477_v39 = vadd.f32 %v1679_v20, %v697_v29 }
 0x29e   :  { %v866_v5 = vpop.f32.mrf.mxu0 }
 0x29f   :  { %v2473_v32 = vadd.f32 %v866_v5, %v695_v3 }
 0x2a0   :  { %v1680_v63 = vpop.f32.mrf.mxu0 }
 0x2a1   :  { %943 = vmax.xlane.f32.xlu1 %v2471_v41  ;;  %945 = vmax.xlane.f32.xlu0 %v2473_v32  ;;  %v2483_v37 = vadd.f32 %v1680_v63, %v698_v45 }
 0x2a2   :  { %v869_v30 = vpop.f32.mrf.mxu0 }
 0x2a3   :  { %v2479_v40 = vadd.f32 %v869_v30, %v696_v1 }
 0x2a4   :  { %v1683_v9 = vpop.f32.mrf.mxu0 }
 0x2a5   :  { %947 = vmax.xlane.f32.xlu1 %v2479_v40  ;;  %949 = vmax.xlane.f32.xlu0 %v2477_v39  ;;  %v2489_v53 = vadd.f32 %v1683_v9, %v701_v61 }
 0x2a6   :  { %v882_v18 = vpop.f32.mrf.mxu0 }
 0x2a7   :  { %v2485_v43 = vadd.f32 %v882_v18, %v699_v17 }
 0x2a8   :  { %v1684_v42 = vpop.f32.mrf.mxu0 }
 0x2a9   :  { %951 = vmax.xlane.f32.xlu1 %v2483_v37  ;;  %953 = vmax.xlane.f32.xlu0 %v2485_v43  ;;  %v2495_v28 = vadd.f32 %v1684_v42, %v702_v4 }
 0x2aa   :  { %v885_v60 = vpop.f32.mrf.mxu0 }
 0x2ab   :  { %v2491_v34 = vadd.f32 %v885_v60, %v700_v19 }
 0x2ad   :  { %955 = vmax.xlane.f32.xlu1 %v2491_v34  ;;  %957 = vmax.xlane.f32.xlu0 %v2489_v53 }
 0x2b1   :  { %959 = vmax.xlane.f32.xlu1 %v2495_v28 }
 0x2d8   :  { %v902_v23 = vpop.xlane.xlu1 %901 }
 0x2d9   :  { %v963_v38 = vsub.f32 %v2402_v6, %v902_v23 }
 0x2da   :  { %v898_v36 = vpop.xlane.xlu0 %897 }
 0x2db   :  { %v997_v22 = vmul.f32 1.442695, %v963_v38  ;;  %v961_v52 = vsub.f32 %v2404_v11, %v898_v36 }
 0x2dc   :  { %v904_v57 = vpop.xlane.xlu1 %903 }
 0x2dd   :  { %1790 = vpow2.f32 %v997_v22  ;;  %v993_v13 = vmul.f32 1.442695, %v961_v52  ;;  %v964_v27 = vsub.f32 %v2407_v50, %v904_v57 }
 0x2de   :  { %v900_v20 = vpop.xlane.xlu0 %899 }
 0x2df   :  { %v999_v3 = vmul.f32 1.442695, %v964_v27  ;;  %v962_v5 = vsub.f32 %v2410_v12, %v900_v20  ;;  %1792 = vpow2.f32 %v993_v13 }
 0x2e1   :  { %1794 = vpow2.f32 %v999_v3  ;;  %v995_v29 = vmul.f32 1.442695, %v962_v5 }
 0x2e2   :  { %v906_v63 = vpop.xlane.xlu0 %905 }
 0x2e3   :  { %1796 = vpow2.f32 %v995_v29  ;;  %v965_v6 = vsub.f32 %v2414_v24, %v906_v63 }
 0x2e5   :  { %v1001_v1 = vmul.f32 1.442695, %v965_v6 }
 0x2e6   :  { %v908_v30 = vpop.xlane.xlu1 %907  ;;  %v910_v45 = vpop.xlane.xlu0 %909 }
 0x2e7   :  { %v966_v11 = vsub.f32 %v2419_v46, %v908_v30  ;;  %v967_v9 = vsub.f32 %v2417_v10, %v910_v45  ;;  %1798 = vpow2.f32 %v1001_v1 }
 0x2e9   :  { %v1003_v17 = vmul.f32 1.442695, %v966_v11  ;;  %v1005_v50 = vmul.f32 1.442695, %v967_v9 }
 0x2ea   :  { %v1791_v18 = vpop.eup %1790  ;;  %v912_v61 = vpop.xlane.xlu1 %911 }
 0x2eb   :  { %v914_v12 = vpop.xlane.xlu0 %913  ;;  %1800 = vpow2.f32 %v1003_v17  ;;  %v968_v42 = vsub.f32 %v2423_v55, %v912_v61  ;;  %1061 = vadd.xlane.f32.xlu0 %v1791_v18 }
 0x2ec   :  { %v969_v19 = vsub.f32 %v2425_v14, %v914_v12  ;;  %1802 = vpow2.f32 %v1005_v50  ;;  %v1793_v24 = vpop.eup %1792 }
 0x2ed   :  { %v1007_v60 = vmul.f32 1.442695, %v968_v42 }
 0x2ee   :  { %v1795_v4 = vpop.eup %1794  ;;  %v1009_v23 = vmul.f32 1.442695, %v969_v19  ;;  %v916_v46 = vpop.xlane.xlu1 %915 }
 0x2ef   :  { %v918_v38 = vpop.xlane.xlu0 %917  ;;  %1804 = vpow2.f32 %v1007_v60  ;;  %v970_v10 = vsub.f32 %v2431_v8, %v916_v46  ;;  %1063 = vadd.xlane.f32.xlu1 %v1795_v4  ;;  %1057 = vadd.xlane.f32.xlu0 %v1793_v24  ;;  %v1154_v27 = vpack.c.bf16 %v1795_v4, %v1791_v18 }
 0x2f0   :  { %v971_v36 = vsub.f32 %v2429_v7, %v918_v38  ;;  %v1797_v22 = vpop.eup %1796  ;;  %1806 = vpow2.f32 %v1009_v23 }
 0x2f1   :  { %v1011_v52 = vmul.f32 1.442695, %v970_v10  ;;  %v1153_v57 = vpack.c.bf16 %v1797_v22, %v1793_v24 }
 0x2f2   :  { %v1013_v55 = vmul.f32 1.442695, %v971_v36  ;;  %v920_v14 = vpop.xlane.xlu1 %919 }
 0x2f3   :  { %v922_v13 = vpop.xlane.xlu0 %921  ;;  %1808 = vpow2.f32 %v1011_v52  ;;  %v972_v20 = vsub.f32 %v2435_v51, %v920_v14  ;;  %1059 = vadd.xlane.f32.xlu1 %v1797_v22  ;;  %1701 = vmatprep.mubr.bf16.mxu1 %v1153_v57 }
 0x2f4   :  { %v973_v3 = vsub.f32 %v2437_v62, %v922_v13  ;;  %1810 = vpow2.f32 %v1013_v55  ;;  %1702 = vmatmul.mubr.bf16.vlgmr.msra.gmra.mxu1 %v1154_v27  ;;  %v1799_v63 = vpop.eup %1798 }
 0x2f5   :  { %v1015_v7 = vmul.f32 1.442695, %v972_v20  ;;  %1718 = vmatpush3.bf16.msra.mxu1 %v2372_v0 }
 0x2f6   :  { %v1017_v8 = vmul.f32 1.442695, %v973_v3  ;;  %1719 = vmatprep.subr.bf16.mxu1 %v2370_v48  ;;  %v924_v5 = vpop.xlane.xlu1 %923 }
 0x2f7   :  { %v926_v29 = vpop.xlane.xlu0 %925  ;;  %1812 = vpow2.f32 %v1015_v7  ;;  %v974_v6 = vsub.f32 %v2443_v54, %v924_v5 }
 0x2f8   :  { %v975_v51 = vsub.f32 %v2441_v25, %v926_v29  ;;  %v1801_v1 = vpop.eup %1800  ;;  %1814 = vpow2.f32 %v1017_v8 }
 0x2f9   :  { %v1803_v62 = vpop.eup %1802  ;;  %v1019_v30 = vmul.f32 1.442695, %v974_v6  ;;  %1720 = vmatpush3.bf16.msra.mxu1 %v2370_v48  ;;  %v1155_v11 = vpack.c.bf16 %v1801_v1, %v1799_v63 }
 0x2fa   :  { %v1021_v45 = vmul.f32 1.442695, %v975_v51  ;;  %1721 = vmatprep.subr.bf16.mxu1 %v2344_v16  ;;  %1069 = vadd.xlane.f32.xlu0 %v1803_v62  ;;  %v928_v0 = vpop.xlane.xlu1 %927 }
 0x2fb   :  { %1816 = vpow2.f32 %v1019_v30  ;;  %v976_v9 = vsub.f32 %v2447_v35, %v928_v0  ;;  %1705 = vmatprep.mubr.bf16.mxu1 %v1155_v11 }
 0x2fc   :  { %v1805_v17 = vpop.eup %1804  ;;  %1818 = vpow2.f32 %v1021_v45 }
 0x2fd   :  { %v1023_v54 = vmul.f32 1.442695, %v976_v9  ;;  %1722 = vmatpush3.bf16.msra.mxu1 %v2344_v16  ;;  %1071 = vadd.xlane.f32.xlu1 %v1805_v17  ;;  %v1156_v25 = vpack.c.bf16 %v1805_v17, %v1803_v62  ;;  %v1807_v48 = vpop.eup %1806 }
 0x2fe   :  { %1723 = vmatprep.subr.bf16.mxu1 %v2353_v47  ;;  %1065 = vadd.xlane.f32.xlu0 %v1799_v63 }
 0x2ff   :  { %1820 = vpow2.f32 %v1023_v54  ;;  %1706 = vmatmul.mubr.bf16.gmra.mxu1 %v1156_v25 }
 0x300   :  { %v1809_v50 = vpop.eup %1808 }
 0x301   :  { %v1811_v18 = vpop.eup %1810  ;;  %1724 = vmatpush3.bf16.msra.mxu1 %v2353_v47  ;;  %1067 = vadd.xlane.f32.xlu1 %v1801_v1  ;;  %v1157_v35 = vpack.c.bf16 %v1809_v50, %v1807_v48 }
 0x302   :  { %1725 = vmatprep.subr.bf16.mxu1 %v2318_v59  ;;  %1077 = vadd.xlane.f32.xlu0 %v1811_v18 }
 0x303   :  { %1709 = vmatprep.mubr.bf16.mxu1 %v1157_v35 }
 0x304   :  { %v1813_v61 = vpop.eup %1812 }
 0x305   :  { %1726 = vmatpush3.bf16.msra.mxu1 %v2318_v59  ;;  %1079 = vadd.xlane.f32.xlu1 %v1813_v61  ;;  %v1158_v16 = vpack.c.bf16 %v1813_v61, %v1811_v18  ;;  %v1815_v12 = vpop.eup %1814 }
 0x306   :  { %1727 = vmatprep.subr.bf16.mxu1 %v2327_v44  ;;  %1073 = vadd.xlane.f32.xlu0 %v1807_v48 }
 0x307   :  { %1710 = vmatmul.mubr.bf16.gmra.mxu1 %v1158_v16 }
 0x308   :  { %v1817_v42 = vpop.eup %1816 }
 0x309   :  { %v1819_v19 = vpop.eup %1818  ;;  %1728 = vmatpush3.bf16.msra.mxu1 %v2327_v44  ;;  %1075 = vadd.xlane.f32.xlu1 %v1809_v50  ;;  %v1159_v47 = vpack.c.bf16 %v1817_v42, %v1815_v12 }
 0x30a   :  { %1729 = vmatprep.subr.bf16.mxu1 %v2294_v21  ;;  %1085 = vadd.xlane.f32.xlu0 %v1819_v19 }
 0x30b   :  { %1713 = vmatprep.mubr.bf16.mxu1 %v1159_v47 }
 0x30c   :  { %v1821_v24 = vpop.eup %1820 }
 0x30d   :  { %1730 = vmatpush3.bf16.msra.mxu1 %v2294_v21  ;;  %1087 = vadd.xlane.f32.xlu1 %v1821_v24  ;;  %v1160_v59 = vpack.c.bf16 %v1821_v24, %v1819_v19 }
 0x30e   :  { %1731 = vmatprep.subr.bf16.mxu1 %v2303_v31  ;;  %1081 = vadd.xlane.f32.xlu0 %v1815_v12 }
 0x30f   :  { %1714 = vmatmul.mubr.bf16.gmra.mxu1 %v1160_v59 }
 0x311   :  { %1732 = vmatpush3.bf16.msra.mxu1 %v2303_v31  ;;  %1083 = vadd.xlane.f32.xlu1 %v1817_v42 }
 0x31a   :  { %v930_v60 = vpop.xlane.xlu0 %929 }
 0x31b   :  { %v977_v44 = vsub.f32 %v2450_v26, %v930_v60 }
 0x31d   :  { %v1025_v4 = vmul.f32 1.442695, %v977_v44 }
 0x31e   :  { %v932_v23 = vpop.xlane.xlu1 %931  ;;  %v934_v46 = vpop.xlane.xlu0 %933 }
 0x31f   :  { %v978_v38 = vsub.f32 %v2455_v58, %v932_v23  ;;  %v979_v10 = vsub.f32 %v2453_v2, %v934_v46  ;;  %1822 = vpow2.f32 %v1025_v4 }
 0x321   :  { %v1027_v21 = vmul.f32 1.442695, %v978_v38  ;;  %v1029_v36 = vmul.f32 1.442695, %v979_v10 }
 0x322   :  { %v936_v22 = vpop.xlane.xlu1 %935  ;;  %v938_v52 = vpop.xlane.xlu0 %937 }
 0x323   :  { %1824 = vpow2.f32 %v1027_v21  ;;  %v980_v55 = vsub.f32 %v2459_v49, %v936_v22  ;;  %v981_v31 = vsub.f32 %v2461_v56, %v938_v52 }
 0x324   :  { %1826 = vpow2.f32 %v1029_v36 }
 0x325   :  { %v1031_v57 = vmul.f32 1.442695, %v980_v55  ;;  %v1033_v26 = vmul.f32 1.442695, %v981_v31 }
 0x326   :  { %v940_v14 = vpop.xlane.xlu1 %939  ;;  %v942_v13 = vpop.xlane.xlu0 %941 }
 0x327   :  { %1828 = vpow2.f32 %v1031_v57  ;;  %v982_v58 = vsub.f32 %v2467_v15, %v940_v14  ;;  %v983_v2 = vsub.f32 %v2465_v33, %v942_v13 }
 0x328   :  { %1830 = vpow2.f32 %v1033_v26 }
 0x329   :  { %v1035_v27 = vmul.f32 1.442695, %v982_v58  ;;  %v1037_v20 = vmul.f32 1.442695, %v983_v2 }
 0x32a   :  { %v944_v3 = vpop.xlane.xlu1 %943  ;;  %v946_v7 = vpop.xlane.xlu0 %945 }
 0x32b   :  { %1832 = vpow2.f32 %v1035_v27  ;;  %v984_v49 = vsub.f32 %v2471_v41, %v944_v3  ;;  %v985_v56 = vsub.f32 %v2473_v32, %v946_v7 }
 0x32c   :  { %1834 = vpow2.f32 %v1037_v20  ;;  %v1823_v6 = vpop.eup %1822 }
 0x32d   :  { %v1039_v8 = vmul.f32 1.442695, %v984_v49  ;;  %v1041_v5 = vmul.f32 1.442695, %v985_v56 }
 0x32e   :  { %v948_v29 = vpop.xlane.xlu1 %947  ;;  %v950_v63 = vpop.xlane.xlu0 %949 }
 0x32f   :  { %1836 = vpow2.f32 %v1039_v8  ;;  %v986_v15 = vsub.f32 %v2479_v40, %v948_v29  ;;  %v987_v33 = vsub.f32 %v2477_v39, %v950_v63 }
 0x330   :  { %v1825_v51 = vpop.eup %1824  ;;  %1838 = vpow2.f32 %v1041_v5 }
 0x331   :  { %v1827_v1 = vpop.eup %1826  ;;  %v1043_v62 = vmul.f32 1.442695, %v986_v15  ;;  %v1045_v30 = vmul.f32 1.442695, %v987_v33  ;;  %v1161_v45 = vpack.c.bf16 %v1825_v51, %v1823_v6 }
 0x332   :  { %1093 = vadd.xlane.f32.xlu0 %v1827_v1  ;;  %v952_v41 = vpop.xlane.xlu1 %951  ;;  %v954_v32 = vpop.xlane.xlu0 %953 }
 0x333   :  { %1840 = vpow2.f32 %v1043_v62  ;;  %v988_v11 = vsub.f32 %v2483_v37, %v952_v41  ;;  %v989_v0 = vsub.f32 %v2485_v43, %v954_v32  ;;  %1733 = vmatprep.mubr.bf16.mxu1 %v1161_v45 }
 0x334   :  { %v1829_v9 = vpop.eup %1828  ;;  %1842 = vpow2.f32 %v1045_v30 }
 0x335   :  { %v1047_v40 = vmul.f32 1.442695, %v988_v11  ;;  %1095 = vadd.xlane.f32.xlu1 %v1829_v9  ;;  %v1162_v39 = vpack.c.bf16 %v1829_v9, %v1827_v1  ;;  %v1049_v17 = vmul.f32 1.442695, %v989_v0  ;;  %v1831_v48 = vpop.eup %1830 }
 0x336   :  { %1089 = vadd.xlane.f32.xlu0 %v1823_v6  ;;  %v956_v54 = vpop.xlane.xlu1 %955  ;;  %v958_v25 = vpop.xlane.xlu0 %957 }
 0x337   :  { %1844 = vpow2.f32 %v1047_v40  ;;  %v990_v50 = vsub.f32 %v2491_v34, %v956_v54  ;;  %v991_v18 = vsub.f32 %v2489_v53, %v958_v25  ;;  %1734 = vmatmul.mubr.bf16.vlgmr.msra.gmra.mxu1 %v1162_v39 }
 0x338   :  { %v1833_v37 = vpop.eup %1832  ;;  %1846 = vpow2.f32 %v1049_v17 }
 0x339   :  { %v1835_v35 = vpop.eup %1834  ;;  %v1051_v43 = vmul.f32 1.442695, %v990_v50  ;;  %1091 = vadd.xlane.f32.xlu1 %v1825_v51  ;;  %v1163_v61 = vpack.c.bf16 %v1833_v37, %v1831_v48  ;;  %v1053_v16 = vmul.f32 1.442695, %v991_v18 }
 0x33a   :  { %1101 = vadd.xlane.f32.xlu0 %v1835_v35  ;;  %v960_v12 = vpop.xlane.xlu1 %959 }
 0x33b   :  { %1848 = vpow2.f32 %v1051_v43  ;;  %v992_v42 = vsub.f32 %v2495_v28, %v960_v12  ;;  %1737 = vmatprep.mubr.bf16.mxu1 %v1163_v61 }
 0x33c   :  { %v1837_v19 = vpop.eup %1836  ;;  %1850 = vpow2.f32 %v1053_v16 }
 0x33d   :  { %v1055_v47 = vmul.f32 1.442695, %v992_v42  ;;  %1103 = vadd.xlane.f32.xlu1 %v1837_v19  ;;  %v1164_v34 = vpack.c.bf16 %v1837_v19, %v1835_v35  ;;  %v1839_v53 = vpop.eup %1838 }
 0x33e   :  { %1097 = vadd.xlane.f32.xlu0 %v1831_v48 }
 0x33f   :  { %1852 = vpow2.f32 %v1055_v47  ;;  %1738 = vmatmul.mubr.bf16.gmra.mxu1 %v1164_v34 }
 0x340   :  { %v1841_v24 = vpop.eup %1840 }
 0x341   :  { %v1843_v59 = vpop.eup %1842  ;;  %1099 = vadd.xlane.f32.xlu1 %v1833_v37  ;;  %v1165_v60 = vpack.c.bf16 %v1841_v24, %v1839_v53 }
 0x342   :  { %1109 = vadd.xlane.f32.xlu0 %v1843_v59 }
 0x343   :  { %1741 = vmatprep.mubr.bf16.mxu1 %v1165_v60 }
 0x344   :  { %v1845_v44 = vpop.eup %1844 }
 0x345   :  { %1111 = vadd.xlane.f32.xlu1 %v1845_v44  ;;  %v1166_v4 = vpack.c.bf16 %v1845_v44, %v1843_v59  ;;  %v1847_v28 = vpop.eup %1846 }
 0x346   :  { %1105 = vadd.xlane.f32.xlu0 %v1839_v53 }
 0x347   :  { %1742 = vmatmul.mubr.bf16.gmra.mxu1 %v1166_v4 }
 0x348   :  { %v1849_v23 = vpop.eup %1848 }
 0x349   :  { %1107 = vadd.xlane.f32.xlu1 %v1841_v24  ;;  %v1167_v46 = vpack.c.bf16 %v1849_v23, %v1847_v28  ;;  %v1851_v38 = vpop.eup %1850 }
 0x34a   :  { %1113 = vadd.xlane.f32.xlu0 %v1847_v28 }
 0x34b   :  { %1745 = vmatprep.mubr.bf16.mxu1 %v1167_v46 }
 0x34c   :  { %v1853_v10 = vpop.eup %1852 }
 0x34d   :  { %1115 = vadd.xlane.f32.xlu1 %v1849_v23  ;;  %v1168_v21 = vpack.c.bf16 %v1853_v10, %v1851_v38 }
 0x34e   :  { %1117 = vadd.xlane.f32.xlu0 %v1851_v38 }
 0x34f   :  { %1746 = vmatmul.mubr.bf16.gmra.mxu1 %v1168_v21 }
 0x351   :  { %1119 = vadd.xlane.f32.xlu1 %v1853_v10 }
 0x374   :  { %v1062_v36 = vpop.xlane.xlu0 %1061 }
 0x375   :  { %1854 = vrcp.f32 %v1062_v36 }
 0x378   :  { %v1064_v22 = vpop.xlane.xlu1 %1063  ;;  %v1058_v52 = vpop.xlane.xlu0 %1057 }
 0x379   :  { %1856 = vrcp.f32 %v1058_v52 }
 0x37a   :  { %1858 = vrcp.f32 %v1064_v22 }
 0x37c   :  { %v1060_v55 = vpop.xlane.xlu1 %1059 }
 0x37d   :  { %1860 = vrcp.f32 %v1060_v55 }
 0x382   :  { %v1855_v2 = vpop.eup %1854 }
 0x383   :  { %v1070_v31 = vpop.xlane.xlu0 %1069 }
 0x384   :  { %1862 = vrcp.f32 %v1070_v31 }
 0x386   :  { %v1072_v57 = vpop.xlane.xlu1 %1071  ;;  %v1857_v7 = vpop.eup %1856 }
 0x387   :  { %v1066_v26 = vpop.xlane.xlu0 %1065  ;;  %v1859_v8 = vpop.eup %1858 }
 0x388   :  { %1864 = vrcp.f32 %v1066_v26 }
 0x389   :  { %1866 = vrcp.f32 %v1072_v57 }
 0x38a   :  { %v1068_v14 = vpop.xlane.xlu1 %1067  ;;  %v1861_v6 = vpop.eup %1860 }
 0x38b   :  { %v1078_v13 = vpop.xlane.xlu0 %1077  ;;  %1868 = vrcp.f32 %v1068_v14 }
 0x38c   :  { %1870 = vrcp.f32 %v1078_v13 }
 0x38e   :  { %v1080_v58 = vpop.xlane.xlu1 %1079 }
 0x38f   :  { %v1074_v20 = vpop.xlane.xlu0 %1073 }
 0x390   :  { %1872 = vrcp.f32 %v1074_v20 }
 0x391   :  { %1874 = vrcp.f32 %v1080_v58  ;;  %v1863_v1 = vpop.eup %1862 }
 0x392   :  { %v1076_v29 = vpop.xlane.xlu1 %1075 }
 0x393   :  { %v1086_v33 = vpop.xlane.xlu0 %1085  ;;  %1876 = vrcp.f32 %v1076_v29 }
 0x394   :  { %1878 = vrcp.f32 %v1086_v33 }
 0x395   :  { %v1865_v41 = vpop.eup %1864 }
 0x396   :  { %v1088_v62 = vpop.xlane.xlu1 %1087  ;;  %v1867_v9 = vpop.eup %1866 }
 0x397   :  { %v1082_v32 = vpop.xlane.xlu0 %1081 }
 0x398   :  { %1880 = vrcp.f32 %v1082_v32  ;;  %v1869_v17 = vpop.eup %1868 }
 0x399   :  { %1882 = vrcp.f32 %v1088_v62  ;;  %v1871_v50 = vpop.eup %1870 }
 0x39a   :  { %v1084_v54 = vpop.xlane.xlu1 %1083 }
 0x39b   :  { %1884 = vrcp.f32 %v1084_v54 }
 0x39d   :  { %v1873_v35 = vpop.eup %1872 }
 0x39e   :  { %v1875_v16 = vpop.eup %1874 }
 0x3a0   :  { %v1877_v19 = vpop.eup %1876 }
 0x3a1   :  { %v1879_v53 = vpop.eup %1878 }
 0x3a5   :  { %v1881_v60 = vpop.eup %1880 }
 0x3a6   :  { %v1883_v28 = vpop.eup %1882 }
 0x3a8   :  { %v1885_v38 = vpop.eup %1884 }
 0x3b4   :  { %v1703_v27 = vpop.f32.mrf.mxu1 }
 0x3b5   :  { %v1381_v3 = vmul.f32 %v1855_v2, %v1703_v27 }
 0x3b6   :  { %v1219_v49 = vpop.f32.mrf.mxu1 }
 0x3b7   :  { %1413 = vst [vmem:[#allocation8 + $0x10] sm:$0xff] %v1381_v3  ;;  %v1379_v56 = vmul.f32 %v1857_v7, %v1219_v49 }
 0x3b8   :  { %v1704_v5 = vpop.f32.mrf.mxu1 }
 0x3b9   :  { %1411 = vst [vmem:[#allocation8] sm:$0xff] %v1379_v56  ;;  %v1382_v63 = vmul.f32 %v1859_v8, %v1704_v5 }
 0x3ba   :  { %v1222_v15 = vpop.f32.mrf.mxu1 }
 0x3bb   :  { %1414 = vst [vmem:[#allocation8 + $0x18] sm:$0xff] %v1382_v63  ;;  %v1380_v51 = vmul.f32 %v1861_v6, %v1222_v15  ;;  %v1094_v10 = vpop.xlane.xlu0 %1093 }
 0x3bc   :  { %1886 = vrcp.f32 %v1094_v10 }
 0x3bd   :  { %1412 = vst [vmem:[#allocation8 + $0x8] sm:$0xff] %v1380_v51 }
 0x3be   :  { %v1096_v22 = vpop.xlane.xlu1 %1095 }
 0x3bf   :  { %v1707_v30 = vpop.f32.mrf.mxu1  ;;  %v1090_v52 = vpop.xlane.xlu0 %1089 }
 0x3c0   :  { %v1385_v45 = vmul.f32 %v1863_v1, %v1707_v30  ;;  %1888 = vrcp.f32 %v1090_v52 }
 0x3c1   :  { %v1235_v11 = vpop.f32.mrf.mxu1  ;;  %1890 = vrcp.f32 %v1096_v22 }
 0x3c2   :  { %1417 = vst [vmem:[#allocation8 + $0x30] sm:$0xff] %v1385_v45  ;;  %v1383_v0 = vmul.f32 %v1865_v41, %v1235_v11  ;;  %v1092_v55 = vpop.xlane.xlu1 %1091 }
 0x3c3   :  { %v1708_v40 = vpop.f32.mrf.mxu1  ;;  %v1102_v31 = vpop.xlane.xlu0 %1101  ;;  %1892 = vrcp.f32 %v1092_v55 }
 0x3c4   :  { %1415 = vst [vmem:[#allocation8 + $0x20] sm:$0xff] %v1383_v0  ;;  %v1386_v39 = vmul.f32 %v1867_v9, %v1708_v40  ;;  %1894 = vrcp.f32 %v1102_v31 }
 0x3c5   :  { %v1238_v25 = vpop.f32.mrf.mxu1 }
 0x3c6   :  { %1418 = vst [vmem:[#allocation8 + $0x38] sm:$0xff] %v1386_v39  ;;  %v1384_v48 = vmul.f32 %v1869_v17, %v1238_v25  ;;  %v1104_v57 = vpop.xlane.xlu1 %1103 }
 0x3c7   :  { %v1711_v18 = vpop.f32.mrf.mxu1  ;;  %v1098_v26 = vpop.xlane.xlu0 %1097 }
 0x3c8   :  { %1416 = vst [vmem:[#allocation8 + $0x28] sm:$0xff] %v1384_v48  ;;  %v1389_v37 = vmul.f32 %v1871_v50, %v1711_v18  ;;  %1896 = vrcp.f32 %v1098_v26 }
 0x3c9   :  { %v1251_v43 = vpop.f32.mrf.mxu1  ;;  %1898 = vrcp.f32 %v1104_v57  ;;  %v1887_v27 = vpop.eup %1886 }
 0x3ca   :  { %1421 = vst [vmem:[#allocation8 + $0x50] sm:$0xff] %v1389_v37  ;;  %v1387_v61 = vmul.f32 %v1873_v35, %v1251_v43  ;;  %v1100_v14 = vpop.xlane.xlu1 %1099 }
 0x3cb   :  { %v1712_v12 = vpop.f32.mrf.mxu1  ;;  %v1110_v13 = vpop.xlane.xlu0 %1109  ;;  %1900 = vrcp.f32 %v1100_v14 }
 0x3cc   :  { %1419 = vst [vmem:[#allocation8 + $0x40] sm:$0xff] %v1387_v61  ;;  %v1390_v42 = vmul.f32 %v1875_v16, %v1712_v12  ;;  %1902 = vrcp.f32 %v1110_v13 }
 0x3cd   :  { %v1254_v47 = vpop.f32.mrf.mxu1  ;;  %v1889_v49 = vpop.eup %1888 }
 0x3ce   :  { %1422 = vst [vmem:[#allocation8 + $0x58] sm:$0xff] %v1390_v42  ;;  %v1388_v34 = vmul.f32 %v1877_v19, %v1254_v47  ;;  %v1112_v58 = vpop.xlane.xlu1 %1111  ;;  %v1891_v29 = vpop.eup %1890 }
 0x3cf   :  { %v1715_v24 = vpop.f32.mrf.mxu1  ;;  %v1106_v2 = vpop.xlane.xlu0 %1105 }
 0x3d0   :  { %1420 = vst [vmem:[#allocation8 + $0x48] sm:$0xff] %v1388_v34  ;;  %v1393_v59 = vmul.f32 %v1879_v53, %v1715_v24  ;;  %1904 = vrcp.f32 %v1106_v2  ;;  %v1893_v15 = vpop.eup %1892 }
 0x3d1   :  { %v1267_v44 = vpop.f32.mrf.mxu1  ;;  %1906 = vrcp.f32 %v1112_v58  ;;  %v1895_v62 = vpop.eup %1894 }
 0x3d2   :  { %1425 = vst [vmem:[#allocation8 + $0x70] sm:$0xff] %v1393_v59  ;;  %v1391_v4 = vmul.f32 %v1881_v60, %v1267_v44  ;;  %v1108_v20 = vpop.xlane.xlu1 %1107 }
 0x3d3   :  { %v1716_v23 = vpop.f32.mrf.mxu1  ;;  %v1114_v56 = vpop.xlane.xlu0 %1113  ;;  %1908 = vrcp.f32 %v1108_v20 }
 0x3d4   :  { %1423 = vst [vmem:[#allocation8 + $0x60] sm:$0xff] %v1391_v4  ;;  %v1394_v46 = vmul.f32 %v1883_v28, %v1716_v23 }
 0x3d5   :  { %v1270_v21 = vpop.f32.mrf.mxu1  ;;  %v1897_v32 = vpop.eup %1896 }
 0x3d6   :  { %1426 = vst [vmem:[#allocation8 + $0x78] sm:$0xff] %v1394_v46  ;;  %v1392_v36 = vmul.f32 %v1885_v38, %v1270_v21  ;;  %v1116_v33 = vpop.xlane.xlu1 %1115  ;;  %v1899_v9 = vpop.eup %1898 }
 0x3d7   :  { %v1118_v30 = vpop.xlane.xlu0 %1117 }
 0x3d8   :  { %1424 = vst [vmem:[#allocation8 + $0x68] sm:$0xff] %v1392_v36  ;;  %1910 = vrcp.f32 %v1118_v30  ;;  %v1901_v54 = vpop.eup %1900 }
 0x3d9   :  { %1912 = vrcp.f32 %v1114_v56  ;;  %v1903_v50 = vpop.eup %1902 }
 0x3da   :  { %v1120_v40 = vpop.xlane.xlu1 %1119 }
 0x3db   :  { %1914 = vrcp.f32 %v1120_v40 }
 0x3dc   :  { %1916 = vrcp.f32 %v1116_v33 }
 0x3dd   :  { %v1905_v35 = vpop.eup %1904 }
 0x3de   :  { %v1907_v16 = vpop.eup %1906 }
 0x3e0   :  { %v1909_v19 = vpop.eup %1908 }
 0x3e5   :  { %v1911_v53 = vpop.eup %1910 }
 0x3e6   :  { %v1913_v60 = vpop.eup %1912 }
 0x3e8   :  { %v1915_v28 = vpop.eup %1914 }
 0x3e9   :  { %v1917_v38 = vpop.eup %1916 }
 0x3f7   :  { %v1735_v3 = vpop.f32.mrf.mxu1 }
 0x3f8   :  { %v1397_v7 = vmul.f32 %v1887_v27, %v1735_v3 }
 0x3f9   :  { %v1316_v8 = vpop.f32.mrf.mxu1 }
 0x3fa   :  { %1429 = vst [vmem:[#allocation8 + $0x90] sm:$0xff] %v1397_v7  ;;  %v1395_v5 = vmul.f32 %v1889_v49, %v1316_v8 }
 0x3fb   :  { %v1736_v63 = vpop.f32.mrf.mxu1 }
 0x3fc   :  { %1427 = vst [vmem:[#allocation8 + $0x80] sm:$0xff] %v1395_v5  ;;  %v1398_v6 = vmul.f32 %v1891_v29, %v1736_v63 }
 0x3fd   :  { %v1319_v51 = vpop.f32.mrf.mxu1 }
 0x3fe   :  { %1430 = vst [vmem:[#allocation8 + $0x98] sm:$0xff] %v1398_v6  ;;  %v1396_v1 = vmul.f32 %v1893_v15, %v1319_v51 }
 0x3ff   :  { %v1739_v45 = vpop.f32.mrf.mxu1 }
 0x400   :  { %1428 = vst [vmem:[#allocation8 + $0x88] sm:$0xff] %v1396_v1  ;;  %v1401_v41 = vmul.f32 %v1895_v62, %v1739_v45 }
 0x401   :  { %v1332_v11 = vpop.f32.mrf.mxu1 }
 0x402   :  { %1433 = vst [vmem:[#allocation8 + $0xb0] sm:$0xff] %v1401_v41  ;;  %v1399_v0 = vmul.f32 %v1897_v32, %v1332_v11 }
 0x403   :  { %v1740_v39 = vpop.f32.mrf.mxu1 }
 0x404   :  { %1431 = vst [vmem:[#allocation8 + $0xa0] sm:$0xff] %v1399_v0  ;;  %v1402_v17 = vmul.f32 %v1899_v9, %v1740_v39 }
 0x405   :  { %v1335_v25 = vpop.f32.mrf.mxu1 }
 0x406   :  { %1434 = vst [vmem:[#allocation8 + $0xb8] sm:$0xff] %v1402_v17  ;;  %v1400_v48 = vmul.f32 %v1901_v54, %v1335_v25 }
 0x407   :  { %v1743_v18 = vpop.f32.mrf.mxu1 }
 0x408   :  { %1432 = vst [vmem:[#allocation8 + $0xa8] sm:$0xff] %v1400_v48  ;;  %v1405_v37 = vmul.f32 %v1903_v50, %v1743_v18 }
 0x409   :  { %v1348_v43 = vpop.f32.mrf.mxu1 }
 0x40a   :  { %1437 = vst [vmem:[#allocation8 + $0xd0] sm:$0xff] %v1405_v37  ;;  %v1403_v61 = vmul.f32 %v1905_v35, %v1348_v43 }
 0x40b   :  { %v1744_v12 = vpop.f32.mrf.mxu1 }
 0x40c   :  { %1435 = vst [vmem:[#allocation8 + $0xc0] sm:$0xff] %v1403_v61  ;;  %v1406_v42 = vmul.f32 %v1907_v16, %v1744_v12 }
 0x40d   :  { %v1351_v47 = vpop.f32.mrf.mxu1 }
 0x40e   :  { %1438 = vst [vmem:[#allocation8 + $0xd8] sm:$0xff] %v1406_v42  ;;  %v1404_v34 = vmul.f32 %v1909_v19, %v1351_v47 }
 0x40f   :  { %v1747_v24 = vpop.f32.mrf.mxu1 }
 0x410   :  { %1436 = vst [vmem:[#allocation8 + $0xc8] sm:$0xff] %v1404_v34  ;;  %v1409_v59 = vmul.f32 %v1911_v53, %v1747_v24 }
 0x411   :  { %v1364_v44 = vpop.f32.mrf.mxu1 }
 0x412   :  { %1441 = vst [vmem:[#allocation8 + $0xf0] sm:$0xff] %v1409_v59  ;;  %v1407_v4 = vmul.f32 %v1913_v60, %v1364_v44 }
 0x413   :  { %v1748_v23 = vpop.f32.mrf.mxu1 }
 0x414   :  { %1439 = vst [vmem:[#allocation8 + $0xe0] sm:$0xff] %v1407_v4  ;;  %v1410_v46 = vmul.f32 %v1915_v28, %v1748_v23 }
 0x415   :  { %v1367_v10 = vpop.f32.mrf.mxu1 }
 0x416   :  { %1442 = vst [vmem:[#allocation8 + $0xf8] sm:$0xff] %v1410_v46  ;;  %v1408_v21 = vmul.f32 %v1917_v38, %v1367_v10 }
 0x418   :  { %1440 = vst [vmem:[#allocation8 + $0xe8] sm:$0xff] %v1408_v21 }
 0x419   :  { %1989 = shalt.err (!%p1986_p5)
}
 0x41a   :  { %1454 = dma.vmem_to_hbm [thread:$0]  %s1449_s7, 4096, %s2555_s4, [#allocation4], %s2008_s25, %s2008_s25, %s2009_s26  }
 0x41b   :  { %2002 = dma.done.wait [#allocation4], 4096  }
 0x41c   :  { %2003 = vsyncadd [#allocation4], 4294963200 }
 0x41d   :  { %1458 = vsyncpa [#allocation3], 1 }
 0x41e   :  { %1459 = vsyncpa [#allocation6], 1 }
 0x41f   :  { %1460 = vsyncpa [#allocation4], 1 }

</bundles_post_ra>
